<compile_context>
chip_gen: v7x
topology: tpu7x:2x2x1
jax: 0.10.0
libtpu: 0.0.40
codegen_flags: <defaults>
</compile_context>

<pallas_src>
import functools
import numpy as np
import jax
import jax.numpy as jnp
from jax.experimental import pallas as pl
from jax.experimental.pallas import tpu as pltpu


def _dft_matrices(n):
    """Real/imag parts of the n-point DFT matrix F[j,k] = exp(-2*pi*i*j*k/n)."""
    k = np.arange(n)
    ang = -2.0 * np.pi * np.outer(k, k) / n
    return np.cos(ang).astype(np.float32), np.sin(ang).astype(np.float32)


def _mm(a, b, fast_bf16):
    """MXU matmul with f32 accumulation; optional 1-pass bf16 fast path."""
    if fast_bf16:
        return jnp.dot(a.astype(jnp.bfloat16), b.astype(jnp.bfloat16),
                       preferred_element_type=jnp.float32)
    return jnp.dot(a, b, preferred_element_type=jnp.float32,
                   precision=jax.lax.Precision.HIGHEST)


def _emphasize_kernel(x_ref, m_ref, fwf_ref, fhf_ref, fhinv_ref, fwinv_ref, out_ref,
                      *, bb, H, W, only_ifft, fast_bf16):
    x3 = x_ref[...]                                   # (bb, H, W) real images
    x2 = x3.reshape(bb * H, W)

    # ---- forward W-side DFT (real input):  [Pr | Pi] = x @ [FWr | FWi]   (one dot, N = 2W)
    p = _mm(x2, fwf_ref[...], fast_bf16)              # (bb*H, 2W)
    p3 = p.reshape(bb, H, 2 * W)
    pst = jnp.concatenate([p3[:, :, :W], p3[:, :, W:]], axis=1)   # (bb, 2H, W) = [Pr; Pi]

    fh_fwd = fhf_ref[...]                             # (2H, 2H) = [[FHr,-FHi],[FHi, FHr]]
    fh_inv = fhinv_ref[...]                           # (2H, 2H) = [[FHr, FHi],[-FHi, FHr]]
    m3 = m_ref[...]                                   # (bb, H, W) pre-shifted mask * 1/(H*W)
    mst = jnp.concatenate([m3, m3], axis=1)           # (bb, 2H, W)

    # ---- forward H-side DFT -> mask -> inverse H-side DFT, per image (bb is small & static),
    #      each a single block-complex matmul with the true (2H, 2H) constant (no kron waste).
    s_imgs = []
    for b in range(bb):
        q_b = _mm(fh_fwd, pst[b], fast_bf16)          # (2H, W) = [Qr; Qi]
        y_b = q_b * mst[b]                            # masked (1/(H*W) already folded in)
        s_imgs.append(_mm(fh_inv, y_b, fast_bf16))    # (2H, W) = [Sr; Si]
    s = jnp.stack(s_imgs, axis=0)                     # (bb, 2H, W)

    # ---- inverse W-side DFT:  [Zr | Zi] = [Sr | Si] @ [[FWr,-FWi],[FWi,FWr]]   (one dot)
    sc = jnp.concatenate([s[:, :H, :], s[:, H:, :]], axis=2).reshape(bb * H, 2 * W)
    z = _mm(sc, fwinv_ref[...], fast_bf16)            # (bb*H, 2W)
    zr = z[:, :W]
    zi = z[:, W:]
    x_ifft = jnp.sqrt(zr * zr + zi * zi).reshape(bb, H, W)

    if only_ifft:
        out_ref[:, 0, :, :] = x_ifft
    else:
        out_ref[:, 0, :, :] = x3
        out_ref[:, 1, :, :] = x_ifft
        out_ref[:, 2, :, :] = jnp.abs(x_ifft - x3)


def emphasize_pallas(x, pattern_importance, clustered_idx, weight_factor=2.0,
                     combination='stack', fast_bf16=False):
    """x: (B, H, W) float. pattern_importance: (B, n_clusters) float.
    Returns ((B, 3, H, W) f32, pattern_importance), matching the torch module's forward."""
    B, H, W = x.shape
    x = x.astype(jnp.float32)
    pattern_importance = pattern_importance.astype(jnp.float32)
    only_ifft = (combination == 'only_ifft')
    n_ch = 1 if only_ifft else 3

    # ------------------------------------------------------------- pre-shifted mask (glue)
    # Per-pixel owning-cluster map (last-write-wins, like the torch loop). The spatial half of
    # the all-axes ifftshift is applied to this map on the host; the batch half is applied to
    # pattern_importance.  One gather then builds the whole (B, H, W) mask.
    n_clusters = int(pattern_importance.shape[1]) if pattern_importance.ndim == 2 else 0
    id_map = np.full((H, W), -1, dtype=np.int32)
    for i, (idxx, idxy) in enumerate(clustered_idx):
        id_map[np.asarray(idxx, dtype=np.int64), np.asarray(idxy, dtype=np.int64)] = i
    id_s = np.fft.ifftshift(id_map)
    if n_clusters > 0 and len(clustered_idx) > 0:
        vals_s = jnp.fft.ifftshift(pattern_importance * jnp.float32(weight_factor), axes=0)
        gathered = jnp.take(vals_s, jnp.asarray(np.clip(id_s, 0, None)), axis=1)  # (B, H, W)
        mask_s = jnp.where(jnp.asarray(id_s >= 0)[None, :, :], gathered, jnp.float32(1.0))
    else:
        mask_s = jnp.ones((B, H, W), jnp.float32)
    mask_s = mask_s * jnp.float32(1.0 / (H * W))      # fold the ifft2 normalization into the mask

    # ------------------------------------------------------------- generation-aware tiling
    devs = jax.devices()
    kind = (getattr(devs[0], "device_kind", "") or "").lower() if devs else ""
    is_v5e = ("v5 lite" in kind) or ("v5e" in kind) or ("v5litepod" in kind)
    is_v7 = "v7" in kind
    n_cores = 2 if is_v7 else 1                       # v7x: 2 TensorCores per chip
    row_target = 128 if is_v5e else 256               # MXU row-fill target for the W-side dots

    bb = max(1, min(B, row_target // max(H, 1)))
    lane_2w = max(2 * W, 128)                         # f32 temporaries are lane-padded to 128
    live_per_img = 4 * (10 * H * lane_2w + 4 * H * H)
    bb = min(bb, max(1, (8 << 20) // max(1, live_per_img)))   # bound per-step live temporaries
    bb = min(bb, 32)                                  # bound the static per-image unroll
    if n_cores > 1 and B >= n_cores:
        bb = min(bb, -(-B // n_cores))                # >= n_cores grid steps -> both cores busy
    b_pad = -(-B // bb) * bb                          # pad the batch instead of shrinking bb

    if b_pad != B:
        pad = b_pad - B
        x = jnp.concatenate([x, jnp.zeros((pad, H, W), jnp.float32)], axis=0)
        mask_s = jnp.concatenate([mask_s, jnp.ones((pad, H, W), jnp.float32)], axis=0)

    # ------------------------------------------------------------- DFT constants (block-complex)
    fhr, fhi = _dft_matrices(H)
    fwr, fwi = _dft_matrices(W)
    fw_fwd = jnp.asarray(np.concatenate([fwr, fwi], axis=1))        # (W, 2W):  x @ F_W
    fh_fwd = jnp.asarray(np.block([[fhr, -fhi], [fhi, fhr]]))       # (2H, 2H): F_H @ (.)
    fh_inv = jnp.asarray(np.block([[fhr, fhi], [-fhi, fhr]]))       # (2H, 2H): conj(F_H) @ (.)
    fw_inv = jnp.asarray(np.block([[fwr, -fwi], [fwi, fwr]]))       # (2W, 2W): (.) @ conj(F_W)

    # ------------------------------------------------------------- VMEM budget / cost hint
    def _tile_bytes(*shape):
        lead = 1
        for d in shape[:-2]:
            lead *= int(d)
        sub = -(-int(shape[-2]) // 8) * 8
        lane = -(-int(shape[-1]) // 128) * 128
        return 4 * lead * sub * lane

    const_bytes = (_tile_bytes(W, 2 * W) + 2 * _tile_bytes(2 * H, 2 * H)
                   + _tile_bytes(2 * W, 2 * W))
    io_bytes = 2 * (2 * _tile_bytes(bb, H, W) + _tile_bytes(bb, n_ch, H, W))
    need = 2 * const_bytes + io_bytes + bb * live_per_img
    vmem_cap = (48 << 20) if is_v7 else (100 << 20)   # leave headroom on v7x's 64 MiB VMEM
    vmem_limit = int(min(max(int(need * 1.4), 32 << 20), vmem_cap))

    cost = pl.CostEstimate(
        flops=int(b_pad * (12 * H * W * W + 16 * H * H * W + 10 * H * W)),
        transcendentals=int(b_pad * H * W),
        bytes_accessed=int(4 * ((2 + n_ch) * b_pad * H * W
                                + 2 * W * W + 2 * (2 * H) * (2 * H) + (2 * W) * (2 * W))),
    )

    kernel = functools.partial(_emphasize_kernel, bb=bb, H=H, W=W,
                               only_ifft=only_ifft, fast_bf16=fast_bf16)
    img_spec = pl.BlockSpec((bb, H, W), lambda g: (g, 0, 0))
    out = pl.pallas_call(
        kernel,
        out_shape=jax.ShapeDtypeStruct((b_pad, n_ch, H, W), jnp.float32),
        grid=(b_pad // bb,),
        in_specs=[img_spec, img_spec,
                  pl.BlockSpec((W, 2 * W), lambda g: (0, 0)),
                  pl.BlockSpec((2 * H, 2 * H), lambda g: (0, 0)),
                  pl.BlockSpec((2 * H, 2 * H), lambda g: (0, 0)),
                  pl.BlockSpec((2 * W, 2 * W), lambda g: (0, 0))],
        out_specs=pl.BlockSpec((bb, n_ch, H, W), lambda g: (g, 0, 0, 0)),
        compiler_params=pltpu.CompilerParams(
            dimension_semantics=("parallel",),
            vmem_limit_bytes=vmem_limit),
        cost_estimate=cost,
    )(x, mask_s, fw_fwd, fh_fwd, fh_inv, fw_inv)

    out = out[:B]
    if only_ifft:
        out = jnp.broadcast_to(out, (B, 3, H, W))
    return out, pattern_importance


def _reference(x, pattern_importance, clustered_idx, weight_factor, combination):
    """Plain jnp reference mirroring the torch forward exactly."""
    B, H, W = x.shape
    x_fft = jnp.fft.fftshift(jnp.fft.fft2(x))          # fftshift over all dims (torch default)
    mask = jnp.ones((B, H, W), jnp.float32)
    for i, (idxx, idxy) in enumerate(clustered_idx):
        for j in range(pattern_importance.shape[0]):
            mask = mask.at[j, jnp.asarray(idxx), jnp.asarray(idxy)].set(
                pattern_importance[j, i] * weight_factor)
    x_reject = x_fft * mask
    x_ifft = jnp.abs(jnp.fft.ifft2(jnp.fft.ifftshift(x_reject)))
    if combination == 'only_ifft':
        x_new = jnp.repeat(x_ifft[:, None, :, :], 3, axis=1)
    else:
        x_new = jnp.stack([x, x_ifft, jnp.abs(x_ifft - x)], axis=1)
    return x_new


if __name__ == "__main__":
    B, H, W = 2, 16, 16
    n_clusters = 4
    weight_factor = 2.0

    key = jax.random.PRNGKey(0)
    kx, kp = jax.random.split(key)
    x = jax.random.uniform(kx, (B, H, W), dtype=jnp.float32)
    pattern_importance = jax.random.uniform(kp, (B, n_clusters), dtype=jnp.float32)

    # Deterministic synthetic "extract.clustered_idx": each cluster is a small set of
    # (row, col) frequency-bin indices.
    rng = np.random.RandomState(0)
    clustered_idx = []
    for _ in range(n_clusters):
        idxx = rng.randint(0, H, size=6)
        idxy = rng.randint(0, W, size=6)
        clustered_idx.append((idxx, idxy))

    # 'stack' branch
    x_new, pi_out = emphasize_pallas(x, pattern_importance, clustered_idx,
                                     weight_factor, combination='stack')
    jax.block_until_ready(x_new)
    ref = _reference(x, pattern_importance, clustered_idx, weight_factor, 'stack')
    np.testing.assert_allclose(np.asarray(x_new), np.asarray(ref), rtol=5e-3, atol=5e-3)
    assert x_new.shape == (B, 3, H, W)
    assert pi_out.shape == pattern_importance.shape

    # 'only_ifft' branch
    x_new2, _ = emphasize_pallas(x, pattern_importance, clustered_idx,
                                 weight_factor, combination='only_ifft')
    jax.block_until_ready(x_new2)
    ref2 = _reference(x, pattern_importance, clustered_idx, weight_factor, 'only_ifft')
    np.testing.assert_allclose(np.asarray(x_new2), np.asarray(ref2), rtol=5e-3, atol=5e-3)

    print("KERNEL_OK")
</pallas_src>

<mosaic_0001>
module attributes {stable_mosaic.version = 11 : i64} {
  func.func @_emphasize_kernel(%arg0: i32, %arg1: memref<2x16x16xf32, #tpu.memory_space<vmem>>, %arg2: memref<2x16x16xf32, #tpu.memory_space<vmem>>, %arg3: memref<16x32xf32, #tpu.memory_space<vmem>>, %arg4: memref<32x32xf32, #tpu.memory_space<vmem>>, %arg5: memref<32x32xf32, #tpu.memory_space<vmem>>, %arg6: memref<32x32xf32, #tpu.memory_space<vmem>>, %arg7: memref<2x3x16x16xf32, #tpu.memory_space<vmem>>) attributes {dimension_semantics = [#tpu.dimension_semantics<parallel>], iteration_bounds = array<i64: 1>, scalar_prefetch = 0 : i64, scratch_operands = 0 : i64, tpu.core_type = #tpu.core_type<tc>, window_params = [{transform_indices = @transform_0, window_bounds = array<i64: 2, 16, 16>}, {transform_indices = @transform_1, window_bounds = array<i64: 2, 16, 16>}, {pipeline_mode = #tpu.pipeline_mode<synchronous>, transform_indices = @transform_2, window_bounds = array<i64: 16, 32>}, {pipeline_mode = #tpu.pipeline_mode<synchronous>, transform_indices = @transform_3, window_bounds = array<i64: 32, 32>}, {pipeline_mode = #tpu.pipeline_mode<synchronous>, transform_indices = @transform_4, window_bounds = array<i64: 32, 32>}, {pipeline_mode = #tpu.pipeline_mode<synchronous>, transform_indices = @transform_5, window_bounds = array<i64: 32, 32>}, {transform_indices = @transform_6, window_bounds = array<i64: 2, 3, 16, 16>}]} {
    %c0 = arith.constant 0 : index
    %c0_0 = arith.constant 0 : index
    %c0_1 = arith.constant 0 : index
    %0 = vector.load %arg1[%c0, %c0_0, %c0_1] : memref<2x16x16xf32, #tpu.memory_space<vmem>>, vector<2x16x16xf32>
    %1 = vector.shape_cast %0 : vector<2x16x16xf32> to vector<32x16xf32>
    %c0_2 = arith.constant 0 : index
    %c0_3 = arith.constant 0 : index
    %2 = vector.load %arg3[%c0_2, %c0_3] : memref<16x32xf32, #tpu.memory_space<vmem>>, vector<16x32xf32>
    %cst = arith.constant dense<0.000000e+00> : vector<32x32xf32>
    %3 = tpu.matmul %1, %2, %cst {dimension_numbers = #tpu.dot_dimension_numbers<[1], [0], [0], [1], [0, 0, 1, 1], [], []>, precision = #tpu.contract_precision<fp32>} : vector<32x16xf32>, vector<16x32xf32>, vector<32x32xf32> -> vector<32x32xf32>
    %4 = vector.shape_cast %3 : vector<32x32xf32> to vector<2x16x32xf32>
    %5 = vector.extract_strided_slice %4 {offsets = [0, 0, 0], sizes = [2, 16, 16], strides = [1, 1, 1]} : vector<2x16x32xf32> to vector<2x16x16xf32>
    %6 = vector.extract_strided_slice %4 {offsets = [0, 0, 16], sizes = [2, 16, 16], strides = [1, 1, 1]} : vector<2x16x32xf32> to vector<2x16x16xf32>
    %7 = tpu.concatenate %5, %6 in 1 : vector<2x16x16xf32>, vector<2x16x16xf32> -> vector<2x32x16xf32>
    %c0_4 = arith.constant 0 : index
    %c0_5 = arith.constant 0 : index
    %8 = vector.load %arg4[%c0_4, %c0_5] : memref<32x32xf32, #tpu.memory_space<vmem>>, vector<32x32xf32>
    %c0_6 = arith.constant 0 : index
    %c0_7 = arith.constant 0 : index
    %9 = vector.load %arg5[%c0_6, %c0_7] : memref<32x32xf32, #tpu.memory_space<vmem>>, vector<32x32xf32>
    %c0_8 = arith.constant 0 : index
    %c0_9 = arith.constant 0 : index
    %c0_10 = arith.constant 0 : index
    %10 = vector.load %arg2[%c0_8, %c0_9, %c0_10] : memref<2x16x16xf32, #tpu.memory_space<vmem>>, vector<2x16x16xf32>
    %11 = tpu.concatenate %10, %10 in 1 : vector<2x16x16xf32>, vector<2x16x16xf32> -> vector<2x32x16xf32>
    %12 = vector.extract_strided_slice %7 {offsets = [0, 0, 0], sizes = [1, 32, 16], strides = [1, 1, 1]} : vector<2x32x16xf32> to vector<1x32x16xf32>
    %13 = vector.shape_cast %12 : vector<1x32x16xf32> to vector<32x16xf32>
    %cst_11 = arith.constant dense<0.000000e+00> : vector<32x16xf32>
    %14 = tpu.matmul %8, %13, %cst_11 {dimension_numbers = #tpu.dot_dimension_numbers<[1], [0], [0], [1], [0, 0, 1, 1], [], []>, precision = #tpu.contract_precision<fp32>} : vector<32x32xf32>, vector<32x16xf32>, vector<32x16xf32> -> vector<32x16xf32>
    %15 = vector.extract_strided_slice %11 {offsets = [0, 0, 0], sizes = [1, 32, 16], strides = [1, 1, 1]} : vector<2x32x16xf32> to vector<1x32x16xf32>
    %16 = vector.shape_cast %15 : vector<1x32x16xf32> to vector<32x16xf32>
    %17 = arith.mulf %14, %16 : vector<32x16xf32>
    %cst_12 = arith.constant dense<0.000000e+00> : vector<32x16xf32>
    %18 = tpu.matmul %9, %17, %cst_12 {dimension_numbers = #tpu.dot_dimension_numbers<[1], [0], [0], [1], [0, 0, 1, 1], [], []>, precision = #tpu.contract_precision<fp32>} : vector<32x32xf32>, vector<32x16xf32>, vector<32x16xf32> -> vector<32x16xf32>
    %19 = vector.extract_strided_slice %7 {offsets = [1, 0, 0], sizes = [1, 32, 16], strides = [1, 1, 1]} : vector<2x32x16xf32> to vector<1x32x16xf32>
    %20 = vector.shape_cast %19 : vector<1x32x16xf32> to vector<32x16xf32>
    %cst_13 = arith.constant dense<0.000000e+00> : vector<32x16xf32>
    %21 = tpu.matmul %8, %20, %cst_13 {dimension_numbers = #tpu.dot_dimension_numbers<[1], [0], [0], [1], [0, 0, 1, 1], [], []>, precision = #tpu.contract_precision<fp32>} : vector<32x32xf32>, vector<32x16xf32>, vector<32x16xf32> -> vector<32x16xf32>
    %22 = vector.extract_strided_slice %11 {offsets = [1, 0, 0], sizes = [1, 32, 16], strides = [1, 1, 1]} : vector<2x32x16xf32> to vector<1x32x16xf32>
    %23 = vector.shape_cast %22 : vector<1x32x16xf32> to vector<32x16xf32>
    %24 = arith.mulf %21, %23 : vector<32x16xf32>
    %cst_14 = arith.constant dense<0.000000e+00> : vector<32x16xf32>
    %25 = tpu.matmul %9, %24, %cst_14 {dimension_numbers = #tpu.dot_dimension_numbers<[1], [0], [0], [1], [0, 0, 1, 1], [], []>, precision = #tpu.contract_precision<fp32>} : vector<32x32xf32>, vector<32x16xf32>, vector<32x16xf32> -> vector<32x16xf32>
    %26 = vector.shape_cast %18 : vector<32x16xf32> to vector<1x32x16xf32>
    %27 = vector.shape_cast %25 : vector<32x16xf32> to vector<1x32x16xf32>
    %28 = tpu.concatenate %26, %27 in 0 : vector<1x32x16xf32>, vector<1x32x16xf32> -> vector<2x32x16xf32>
    %29 = vector.extract_strided_slice %28 {offsets = [0, 0, 0], sizes = [2, 16, 16], strides = [1, 1, 1]} : vector<2x32x16xf32> to vector<2x16x16xf32>
    %30 = vector.extract_strided_slice %28 {offsets = [0, 16, 0], sizes = [2, 16, 16], strides = [1, 1, 1]} : vector<2x32x16xf32> to vector<2x16x16xf32>
    %31 = tpu.concatenate %29, %30 in 2 : vector<2x16x16xf32>, vector<2x16x16xf32> -> vector<2x16x32xf32>
    %32 = vector.shape_cast %31 : vector<2x16x32xf32> to vector<32x32xf32>
    %c0_15 = arith.constant 0 : index
    %c0_16 = arith.constant 0 : index
    %33 = vector.load %arg6[%c0_15, %c0_16] : memref<32x32xf32, #tpu.memory_space<vmem>>, vector<32x32xf32>
    %cst_17 = arith.constant dense<0.000000e+00> : vector<32x32xf32>
    %34 = tpu.matmul %32, %33, %cst_17 {dimension_numbers = #tpu.dot_dimension_numbers<[1], [0], [0], [1], [0, 0, 1, 1], [], []>, precision = #tpu.contract_precision<fp32>} : vector<32x32xf32>, vector<32x32xf32>, vector<32x32xf32> -> vector<32x32xf32>
    %35 = vector.extract_strided_slice %34 {offsets = [0, 0], sizes = [32, 16], strides = [1, 1]} : vector<32x32xf32> to vector<32x16xf32>
    %36 = vector.extract_strided_slice %34 {offsets = [0, 16], sizes = [32, 16], strides = [1, 1]} : vector<32x32xf32> to vector<32x16xf32>
    %37 = arith.mulf %35, %35 : vector<32x16xf32>
    %38 = arith.mulf %36, %36 : vector<32x16xf32>
    %39 = arith.addf %37, %38 : vector<32x16xf32>
    %40 = math.sqrt %39 : vector<32x16xf32>
    %41 = vector.shape_cast %40 : vector<32x16xf32> to vector<2x16x16xf32>
    %c0_18 = arith.constant 0 : index
    %c0_19 = arith.constant 0 : index
    %c0_20 = arith.constant 0 : index
    %c0_21 = arith.constant 0 : index
    %42 = vector.load %arg7[%c0_18, %c0_19, %c0_20, %c0_21] : memref<2x3x16x16xf32, #tpu.memory_space<vmem>>, vector<2x1x16x16xf32>
    %43 = vector.shape_cast %42 : vector<2x1x16x16xf32> to vector<2x16x16xf32>
    %44 = vector.shape_cast %0 : vector<2x16x16xf32> to vector<2x1x16x16xf32>
    tpu.vector_store %arg7[%c0_18, %c0_19, %c0_20, %c0_21], %44 {strides = array<i32>} : memref<2x3x16x16xf32, #tpu.memory_space<vmem>>, vector<2x1x16x16xf32>,
    %c0_22 = arith.constant 0 : index
    %c1 = arith.constant 1 : index
    %c0_23 = arith.constant 0 : index
    %c0_24 = arith.constant 0 : index
    %45 = vector.load %arg7[%c0_22, %c1, %c0_23, %c0_24] : memref<2x3x16x16xf32, #tpu.memory_space<vmem>>, vector<2x1x16x16xf32>
    %46 = vector.shape_cast %45 : vector<2x1x16x16xf32> to vector<2x16x16xf32>
    %47 = vector.shape_cast %41 : vector<2x16x16xf32> to vector<2x1x16x16xf32>
    tpu.vector_store %arg7[%c0_22, %c1, %c0_23, %c0_24], %47 {strides = array<i32>} : memref<2x3x16x16xf32, #tpu.memory_space<vmem>>, vector<2x1x16x16xf32>,
    %48 = arith.subf %41, %0 : vector<2x16x16xf32>
    %49 = math.absf %48 : vector<2x16x16xf32>
    %c0_25 = arith.constant 0 : index
    %c2 = arith.constant 2 : index
    %c0_26 = arith.constant 0 : index
    %c0_27 = arith.constant 0 : index
    %50 = vector.load %arg7[%c0_25, %c2, %c0_26, %c0_27] : memref<2x3x16x16xf32, #tpu.memory_space<vmem>>, vector<2x1x16x16xf32>
    %51 = vector.shape_cast %50 : vector<2x1x16x16xf32> to vector<2x16x16xf32>
    %52 = vector.shape_cast %49 : vector<2x16x16xf32> to vector<2x1x16x16xf32>
    tpu.vector_store %arg7[%c0_25, %c2, %c0_26, %c0_27], %52 {strides = array<i32>} : memref<2x3x16x16xf32, #tpu.memory_space<vmem>>, vector<2x1x16x16xf32>,
    return
  }
  func.func @transform_0(%arg0: i32) -> (i32, i32, i32) {
    %c0_i32 = arith.constant 0 : i32
    %c0_i32_0 = arith.constant 0 : i32
    %c0_i32_1 = arith.constant 0 : i32
    return %arg0, %c0_i32, %c0_i32_0 : i32, i32, i32
  }
  func.func @transform_1(%arg0: i32) -> (i32, i32, i32) {
    %c0_i32 = arith.constant 0 : i32
    %c0_i32_0 = arith.constant 0 : i32
    %c0_i32_1 = arith.constant 0 : i32
    return %arg0, %c0_i32, %c0_i32_0 : i32, i32, i32
  }
  func.func @transform_2(%arg0: i32) -> (i32, i32) {
    %c0_i32 = arith.constant 0 : i32
    %c0_i32_0 = arith.constant 0 : i32
    %c0_i32_1 = arith.constant 0 : i32
    return %c0_i32, %c0_i32_0 : i32, i32
  }
  func.func @transform_3(%arg0: i32) -> (i32, i32) {
    %c0_i32 = arith.constant 0 : i32
    %c0_i32_0 = arith.constant 0 : i32
    %c0_i32_1 = arith.constant 0 : i32
    return %c0_i32, %c0_i32_0 : i32, i32
  }
  func.func @transform_4(%arg0: i32) -> (i32, i32) {
    %c0_i32 = arith.constant 0 : i32
    %c0_i32_0 = arith.constant 0 : i32
    %c0_i32_1 = arith.constant 0 : i32
    return %c0_i32, %c0_i32_0 : i32, i32
  }
  func.func @transform_5(%arg0: i32) -> (i32, i32) {
    %c0_i32 = arith.constant 0 : i32
    %c0_i32_0 = arith.constant 0 : i32
    %c0_i32_1 = arith.constant 0 : i32
    return %c0_i32, %c0_i32_0 : i32, i32
  }
  func.func @transform_6(%arg0: i32) -> (i32, i32, i32, i32) {
    %c0_i32 = arith.constant 0 : i32
    %c0_i32_0 = arith.constant 0 : i32
    %c0_i32_1 = arith.constant 0 : i32
    %c0_i32_2 = arith.constant 0 : i32
    return %arg0, %c0_i32, %c0_i32_0, %c0_i32_1 : i32, i32, i32, i32
  }
}

</mosaic_0001>

<bundles_post_ra>
// kernel: tpu_custom_call.1
= control target key start
LH: loop header
LB: loop body
LE: loop exit
PB: predicated region body
PF: predicated region fallthrough
CT: control target
= control target key end

     0   :  { %11 = vsyncpa [#allocation3], 0  ;;  %s5815_s0 = inlined_call_operand.hbm [shape: f32[2,16,16], index: 0, kind: input, shape index: {}]   ;;  %s5816_s1 = inlined_call_operand.hbm [shape: f32[2,16,16], index: 1, kind: input, shape index: {}]   ;;  %s5817_s2 = inlined_call_operand.hbm [shape: f32[16,32], index: 2, kind: input, shape index: {}]   ;;  %s5818_s3 = inlined_call_operand.hbm [shape: f32[32,32], index: 3, kind: input, shape index: {}]   ;;  %s5819_s4 = inlined_call_operand.hbm [shape: f32[32,32], index: 4, kind: input, shape index: {}]   ;;  %s5820_s5 = inlined_call_operand.hbm [shape: f32[32,32], index: 5, kind: input, shape index: {}]   ;;  %s5821_s6 = inlined_call_operand.hbm [shape: f32[2,3,16,16], index: 6, kind: output, shape index: {}]  }
   0x1   :  { %12 = vsyncpa [#allocation6], 0 }
   0x2   :  { %13 = vsyncpa [#allocation9], 0 }
   0x3   :  { %14 = vsyncpa [#allocation12], 0 }
   0x4   :  { %15 = vsyncpa [#allocation4], 0  ;;  %s5297_s21 = smov [#allocation5]   ;;  %s5298_s23 = smov [#allocation8]  }
   0x5   :  { %s33_s22 = sshll.u32 %s5297_s21, 4  ;;  %s57_s24 = sshll.u32 %s5298_s23, 4  ;;  %s34_s22 = int_to_ptr.vmem [resolvable:$true] %s33_s22  ;;  %s5343_s24 = int_to_ptr.vmem [resolvable:$true] %s57_s24 }
   0x6   :  { %s5133_s27 = scalar_lea.hbm %s5816_s1, 512 }
   0x7   :  { %p5134_p0 = scmp.ne.s32.totalorder %s5816_s1, %s5133_s27  ;;  %p5137_p1 = scmp.lt.u32.totalorder %s5133_s27, %s5816_s1 }
   0x9   :  { %p5139_p2 = pnand %p5137_p1, %p5134_p0 }
   0xb   :  { %5142 = shalt.err (!%p5139_p2)
}
   0xc   :  { %s5143_s8 = scalar_lea.vmem %s34_s22, 512  ;;  %p5148_p4 = scmp.lt.s32.totalorder %s34_s22, %s34_s22 }
   0xd   :  { %p5144_p3 = scmp.ne.s32.totalorder %s34_s22, %s5143_s8  ;;  %p5149_p5 = scmp.lt.s32.totalorder %s5143_s8, %s5143_s8 }
   0xf   :  { %p5150_p6 = por %p5149_p5, %p5148_p4 }
  0x11   :  { %p5151_p7 = pnand %p5150_p6, %p5144_p3 }
  0x13   :  { %5154 = shalt.err (!%p5151_p7)
}
  0x14   :  { %s5299_s9 = smov 128   ;;  %s5300_s10 = smov 8  }
  0x15   :  { %39 = dma.hbm_to_vmem [thread:$0]  %s5816_s1, 512, %s34_s22, [#allocation6], %s5299_s9, %s5299_s9, %s5300_s10  }
  0x16   :  { %s5155_s15 = scalar_lea.hbm %s5818_s3, 512 }
  0x17   :  { %p5156_p8 = scmp.ne.s32.totalorder %s5818_s3, %s5155_s15  ;;  %p5159_p9 = scmp.lt.u32.totalorder %s5155_s15, %s5818_s3 }
  0x19   :  { %p5161_p10 = pnand %p5159_p9, %p5156_p8 }
  0x1b   :  { %5164 = shalt.err (!%p5161_p10)
}
  0x1c   :  { %s5165_s20 = scalar_lea.vmem %s5343_s24, 512  ;;  %p5170_p12 = scmp.lt.s32.totalorder %s5343_s24, %s5343_s24 }
  0x1d   :  { %p5166_p11 = scmp.ne.s32.totalorder %s5343_s24, %s5165_s20  ;;  %p5171_p13 = scmp.lt.s32.totalorder %s5165_s20, %s5165_s20 }
  0x1f   :  { %p5172_p0 = por %p5171_p13, %p5170_p12 }
  0x21   :  { %p5173_p1 = pnand %p5172_p0, %p5166_p11 }
  0x23   :  { %5176 = shalt.err (!%p5173_p1)
}
  0x24   :  { %63 = dma.hbm_to_vmem [thread:$0]  %s5818_s3, 512, %s5343_s24, [#allocation9], %s5299_s9, %s5299_s9, %s5300_s10  }
  0x25   :  { %s5301_s22 = smov [#allocation2]   ;;  %s5302_s25 = smov [#allocation7]  }
  0x26   :  { %s21_s23 = sshll.u32 %s5301_s22, 4  ;;  %s45_s26 = sshll.u32 %s5302_s25, 4  ;;  %s22_s23 = int_to_ptr.vmem [resolvable:$true] %s21_s23  ;;  %s5380_s26 = int_to_ptr.vmem [resolvable:$true] %s45_s26 }
  0x27   :  { %s5177_s29 = scalar_lea.hbm %s5815_s0, 512 }
  0x28   :  { %p5178_p2 = scmp.ne.s32.totalorder %s5815_s0, %s5177_s29  ;;  %p5181_p3 = scmp.lt.u32.totalorder %s5177_s29, %s5815_s0 }
  0x2a   :  { %p5183_p4 = pnand %p5181_p3, %p5178_p2 }
  0x2c   :  { %5186 = shalt.err (!%p5183_p4)
}
  0x2d   :  { %s5187_s3 = scalar_lea.vmem %s22_s23, 512  ;;  %p5192_p6 = scmp.lt.s32.totalorder %s22_s23, %s22_s23 }
  0x2e   :  { %p5188_p5 = scmp.ne.s32.totalorder %s22_s23, %s5187_s3  ;;  %p5193_p7 = scmp.lt.s32.totalorder %s5187_s3, %s5187_s3 }
  0x30   :  { %p5194_p8 = por %p5193_p7, %p5192_p6 }
  0x32   :  { %p5195_p9 = pnand %p5194_p8, %p5188_p5 }
  0x34   :  { %5198 = shalt.err (!%p5195_p9)
}
  0x35   :  { %27 = dma.hbm_to_vmem [thread:$0]  %s5815_s0, 512, %s22_s23, [#allocation3], %s5299_s9, %s5299_s9, %s5300_s10  }
  0x36   :  { %s5199_s15 = scalar_lea.hbm %s5817_s2, 256 }
  0x37   :  { %p5200_p10 = scmp.ne.s32.totalorder %s5817_s2, %s5199_s15  ;;  %p5203_p11 = scmp.lt.u32.totalorder %s5199_s15, %s5817_s2 }
  0x39   :  { %p5205_p12 = pnand %p5203_p11, %p5200_p10 }
  0x3b   :  { %5208 = shalt.err (!%p5205_p12)
}
  0x3c   :  { %s5209_s20 = scalar_lea.vmem %s5380_s26, 256  ;;  %p5214_p0 = scmp.lt.s32.totalorder %s5380_s26, %s5380_s26 }
  0x3d   :  { %p5210_p13 = scmp.ne.s32.totalorder %s5380_s26, %s5209_s20  ;;  %p5215_p1 = scmp.lt.s32.totalorder %s5209_s20, %s5209_s20 }
  0x3f   :  { %p5216_p2 = por %p5215_p1, %p5214_p0 }
  0x41   :  { %p5217_p3 = pnand %p5216_p2, %p5210_p13 }
  0x43   :  { %5220 = shalt.err (!%p5217_p3)
}
  0x44   :  { %51 = dma.hbm_to_vmem [thread:$0]  %s5817_s2, 256, %s5380_s26, [#allocation6], %s5299_s9, %s5299_s9, %s5300_s10  }
  0x45   :  { %s5303_s21 = smov [#allocation10]   ;;  %s5304_s23 = smov [#allocation11]  }
  0x46   :  { %s69_s22 = sshll.u32 %s5303_s21, 4  ;;  %s81_s25 = sshll.u32 %s5304_s23, 4  ;;  %s70_s22 = int_to_ptr.vmem [resolvable:$true] %s69_s22  ;;  %s5417_s25 = int_to_ptr.vmem [resolvable:$true] %s81_s25 }
  0x47   :  { %s5221_s29 = scalar_lea.hbm %s5819_s4, 512 }
  0x48   :  { %p5222_p4 = scmp.ne.s32.totalorder %s5819_s4, %s5221_s29  ;;  %p5225_p5 = scmp.lt.u32.totalorder %s5221_s29, %s5819_s4 }
  0x4a   :  { %p5227_p6 = pnand %p5225_p5, %p5222_p4 }
  0x4c   :  { %5230 = shalt.err (!%p5227_p6)
}
  0x4d   :  { %s5231_s2 = scalar_lea.vmem %s70_s22, 512  ;;  %p5236_p8 = scmp.lt.s32.totalorder %s70_s22, %s70_s22 }
  0x4e   :  { %p5232_p7 = scmp.ne.s32.totalorder %s70_s22, %s5231_s2  ;;  %p5237_p9 = scmp.lt.s32.totalorder %s5231_s2, %s5231_s2 }
  0x50   :  { %p5238_p10 = por %p5237_p9, %p5236_p8 }
  0x52   :  { %p5239_p11 = pnand %p5238_p10, %p5232_p7 }
  0x54   :  { %5242 = shalt.err (!%p5239_p11)
}
  0x55   :  { %75 = dma.hbm_to_vmem [thread:$0]  %s5819_s4, 512, %s70_s22, [#allocation9], %s5299_s9, %s5299_s9, %s5300_s10  }
  0x56   :  { %s5243_s13 = scalar_lea.hbm %s5820_s5, 512 }
  0x57   :  { %p5244_p12 = scmp.ne.s32.totalorder %s5820_s5, %s5243_s13  ;;  %p5247_p13 = scmp.lt.u32.totalorder %s5243_s13, %s5820_s5 }
  0x59   :  { %p5249_p0 = pnand %p5247_p13, %p5244_p12 }
  0x5b   :  { %5252 = shalt.err (!%p5249_p0)
}
  0x5c   :  { %s5253_s18 = scalar_lea.vmem %s5417_s25, 512  ;;  %p5258_p2 = scmp.lt.s32.totalorder %s5417_s25, %s5417_s25 }
  0x5d   :  { %p5254_p1 = scmp.ne.s32.totalorder %s5417_s25, %s5253_s18  ;;  %p5259_p3 = scmp.lt.s32.totalorder %s5253_s18, %s5253_s18 }
  0x5f   :  { %p5260_p4 = por %p5259_p3, %p5258_p2 }
  0x61   :  { %p5261_p5 = pnand %p5260_p4, %p5254_p1 }
  0x63   :  { %5264 = shalt.err (!%p5261_p5)
}
  0x64   :  { %87 = dma.hbm_to_vmem [thread:$0]  %s5820_s5, 512, %s5417_s25, [#allocation12], %s5299_s9, %s5299_s9, %s5300_s10  }
  0x65   :  { %5287 = dma.done.wait [#allocation3], 512  }
  0x66   :  { %5288 = vsyncadd [#allocation3], 4294966784 }
  0x67   :  { %5289 = dma.done.wait [#allocation6], 768  }
  0x68   :  { %5290 = vsyncadd [#allocation6], 4294966528 }
  0x69   :  { %5291 = dma.done.wait [#allocation9], 1024  }
  0x6a   :  { %5292 = vsyncadd [#allocation9], 4294966272 }
  0x6b   :  { %5293 = dma.done.wait [#allocation12], 512  }
  0x6c   :  { %5294 = vsyncadd [#allocation12], 4294966784  ;;  %vm112_vm0 = vcmask 130048   ;;  %v110_v0 = vld [vmem:[#allocation7] sm:$0xff]  ;;  %v111_v1 = vld [vmem:[#allocation7 + $0x8] sm:$0xff]  ;;  %vm741_vm1 = vcmask 261120  }
  0x6d   :  { %v5454_v2 = vld [vmem:[#allocation2] sm:$0xff]  ;;  %v126_v3 = vand.u32 4294901760, %v110_v0  ;;  %v129_v4 = vand.u32 4294901760, %v111_v1  ;;  %v5460_v6 = vld [vmem:[#allocation2 + $0x8] sm:$0xff]  ;;  %v5462_v7 = vld [vmem:[#allocation2 + $0x10] sm:$0xff]  ;;  %s5305_s5 = smov 112  }
  0x6e   :  { %v114_v5 = vsel %vm112_vm0, %v5454_v2, 0  ;;  %3932 = vst.msk [vmem:[#allocation13] sm:$0xff] %vm112_vm0, %v5454_v2  ;;  %v5464_v8 = vld [vmem:[#allocation2 + $0x18] sm:$0xff]  ;;  %v117_v10 = vsel %vm112_vm0, %v5460_v6, 0  ;;  %3933 = vst.msk [vmem:[#allocation13 + $0x8] sm:$0xff] %vm112_vm0, %v5460_v6  ;;  %v120_v11 = vsel %vm112_vm0, %v5462_v7, 0 }
  0x6f   :  { %v5466_v9 = vand.u32 4294901760, %v114_v5  ;;  %3934 = vst.msk [vmem:[#allocation13 + $0x30] sm:$0xff] %vm112_vm0, %v5462_v7  ;;  %v123_v12 = vsel %vm112_vm0, %v5464_v8, 0  ;;  %3935 = vst.msk [vmem:[#allocation13 + $0x38] sm:$0xff] %vm112_vm0, %v5464_v8  ;;  %v4730_v13 = vpack.c.bf16 %v129_v4, %v126_v3  ;;  %v202_v14 = vand.u32 4294901760, %v117_v10  ;;  %v729_v44 = vld [vmem:[#allocation8] sm:$0xff] }
  0x70   :  { %v234_v15 = vsub.f32 %v110_v0, %v126_v3  ;;  %v241_v16 = vsub.f32 %v111_v1, %v129_v4  ;;  %v212_v18 = vand.u32 4294901760, %v120_v11  ;;  %v222_v19 = vand.u32 4294901760, %v123_v12  ;;  %s5306_s20 = smov 16   ;;  %s5307_s0 = smov [#allocation13]  }
  0x71   :  { %v193_v17 = vsub.f32 %v114_v5, %v5466_v9  ;;  %4731 = vmatprep.subr.bf16.mxu0 %v4730_v13  ;;  %v203_v20 = vsub.f32 %v117_v10, %v202_v14  ;;  %v743_v45 = vsel %vm741_vm1, %v729_v44, 0  ;;  %s3959_s1 = sshll.u32 %s5307_s0, 4  ;;  %s3960_s1 = int_to_ptr.vmem [resolvable:$true] %s3959_s1 }
  0x72   :  { %v235_v21 = vand.u32 4294901760, %v234_v15  ;;  %v242_v22 = vand.u32 4294901760, %v241_v16  ;;  %4733 = vmatpush3.bf16.msra.mxu0 %v4730_v13  ;;  %v213_v24 = vsub.f32 %v120_v11, %v212_v18  ;;  %v223_v25 = vsub.f32 %v123_v12, %v222_v19  ;;  %s5265_s21 = scalar_lea.vmem %s3960_s1, 1536  ;;  %p5270_p7 = scmp.lt.s32.totalorder %s3960_s1, %s3960_s1 }
  0x73   :  { %v194_v23 = vand.u32 4294901760, %v193_v17  ;;  %v204_v26 = vand.u32 4294901760, %v203_v20  ;;  %v4738_v40 = vpack.c.bf16 %v241_v16, %v234_v15  ;;  %v5485_v46 = vand.u32 4294901760, %v743_v45  ;;  %p5266_p6 = scmp.ne.s32.totalorder %s3960_s1, %s5265_s21  ;;  %p5271_p8 = scmp.lt.s32.totalorder %s5265_s21, %s5265_s21 }
  0x74   :  { %v236_v27 = vsub.f32 %v234_v15, %v235_v21  ;;  %v243_v28 = vsub.f32 %v241_v16, %v242_v22  ;;  %v214_v30 = vand.u32 4294901760, %v213_v24  ;;  %v224_v31 = vand.u32 4294901760, %v223_v25 }
  0x75   :  { %v195_v29 = vsub.f32 %v193_v17, %v194_v23  ;;  %v205_v32 = vsub.f32 %v203_v20, %v204_v26  ;;  %v4746_v43 = vpack.c.bf16 %v242_v22, %v235_v21  ;;  %v5488_v47 = vsub.f32 %v743_v45, %v5485_v46  ;;  %p5272_p9 = por %p5271_p8, %p5270_p7 }
  0x76   :  { %v237_v33 = vand.u32 4294901760, %v236_v27  ;;  %v244_v34 = vand.u32 4294901760, %v243_v28  ;;  %v215_v36 = vsub.f32 %v213_v24, %v214_v30  ;;  %v225_v37 = vsub.f32 %v223_v25, %v224_v31  ;;  %v732_v27 = vld [vmem:[#allocation8 + $0x18] sm:$0xff] }
  0x77   :  { %v196_v35 = vand.u32 4294901760, %v195_v29  ;;  %v206_v38 = vand.u32 4294901760, %v205_v32  ;;  %v5491_v48 = vand.u32 4294901760, %v5488_v47  ;;  %p5273_p10 = pnand %p5272_p9, %p5266_p6 }
  0x78   :  { %v4734_v39 = vpack.c.bf16 %v244_v34, %v237_v33  ;;  %v216_v41 = vand.u32 4294901760, %v215_v36  ;;  %v226_v42 = vand.u32 4294901760, %v225_v37 }
  0x79   :  { %4254 = vmatprep.mubr.f32.mxu0 %v196_v35  ;;  %v826_v49 = vsub.f32 %v5488_v47, %v5491_v48 }
  0x7a   :  { %4255 = vmatmul.mubr.f32.vlgmr.msra.gmra.mrb[0].mxu0 %v206_v38  ;;  %4735 = vmatprep.subr.bf16.mxu0 %v4734_v39 }
  0x7b   :  { %4737 = vmatpush3.bf16.msra.mxu0 %v4734_v39  ;;  %4257 = vmatprep.mubr.f32.mxu0 %v216_v41  ;;  %v5495_v50 = vand.u32 4294901760, %v826_v49 }
  0x7c   :  { %4739 = vmatprep.subr.bf16.mxu0 %v4738_v40 }
  0x7d   :  { %4318 = vmatprep.mubr.f32.mxu1 %v5495_v50 }
  0x7e   :  { %4258 = vmatmul.mubr.f32.gmra.mrb[2].mxu0 %v226_v42 }
  0x7f   :  { %4264 = vmatprep.mubr.f32.mxu0 %v5466_v9 }
  0x82   :  { %4265 = vmatmul.mubr.f32.vlgmr.msra.gmra.mrb[0].mxu0 %v202_v14 }
  0x83   :  { %4741 = vmatpush3.bf16.msra.mxu0 %v4738_v40  ;;  %4267 = vmatprep.mubr.f32.mxu0 %v212_v18 }
  0x84   :  { %4743 = vmatprep.subr.bf16.mxu0 %v4730_v13 }
  0x86   :  { %4268 = vmatmul.mubr.f32.gmra.mrb[2].mxu0 %v222_v19 }
  0x87   :  { %4274 = vmatprep.mubr.f32.mxu0 %v193_v17 }
  0x8a   :  { %4275 = vmatmul.mubr.f32.vlgmr.msra.gmra.mrb[0].mxu0 %v203_v20 }
  0x8b   :  { %4745 = vmatpush3.bf16.msra.mxu0 %v4730_v13  ;;  %4277 = vmatprep.mubr.f32.mxu0 %v213_v24  ;;  %v731_v24 = vld [vmem:[#allocation8 + $0x10] sm:$0xff] }
  0x8c   :  { %4747 = vmatprep.subr.bf16.mxu0 %v4746_v43 }
  0x8e   :  { %4278 = vmatmul.mubr.f32.gmra.mrb[2].mxu0 %v223_v25 }
  0x8f   :  { %4284 = vmatprep.mubr.f32.mxu0 %v194_v23  ;;  %v730_v23 = vld [vmem:[#allocation8 + $0x8] sm:$0xff] }
  0x90   :  { %v746_v25 = vsel %vm741_vm1, %v730_v23, 0  ;;  %v734_v23 = vld [vmem:[#allocation10 + $0x8] sm:$0xff] }
  0x91   :  { %v5520_v28 = vand.u32 4294901760, %v746_v25 }
  0x92   :  { %4285 = vmatmul.mubr.f32.vlgmr.msra.gmra.mrb[0].mxu0 %v204_v26  ;;  %v749_v26 = vsel %vm741_vm1, %v731_v24, 0  ;;  %v735_v24 = vld [vmem:[#allocation10 + $0x10] sm:$0xff] }
  0x93   :  { %4749 = vmatpush3.bf16.msra.mxu0 %v4746_v43  ;;  %4287 = vmatprep.mubr.f32.mxu0 %v214_v30  ;;  %v5522_v29 = vand.u32 4294901760, %v749_v26  ;;  %v752_v30 = vsel %vm741_vm1, %v732_v27, 0  ;;  %v736_v27 = vld [vmem:[#allocation10 + $0x18] sm:$0xff] }
  0x94   :  { %4751 = vmatprep.subr.bf16.mxu0 %v4730_v13  ;;  %v5528_v32 = vand.u32 4294901760, %v752_v30 }
  0x95   :  { %v5531_v33 = vsub.f32 %v749_v26, %v5522_v29  ;;  %v1379_v26 = vsel %vm741_vm1, %v735_v24, 0 }
  0x96   :  { %4288 = vmatmul.mubr.f32.gmra.mrb[2].mxu0 %v224_v31  ;;  %v5526_v31 = vsub.f32 %v746_v25, %v5520_v28  ;;  %v5537_v37 = vsub.f32 %v752_v30, %v5528_v32  ;;  %v1376_v25 = vsel %vm741_vm1, %v734_v23, 0  ;;  %v1382_v30 = vsel %vm741_vm1, %v736_v27, 0  ;;  %v739_v27 = vld [vmem:[#allocation5 + $0x10] sm:$0xff] }
  0x97   :  { %4294 = vmatprep.mubr.f32.mxu0 %v5466_v9  ;;  %v5540_v38 = vand.u32 4294901760, %v5531_v33 }
  0x98   :  { %v5534_v36 = vand.u32 4294901760, %v5526_v31  ;;  %v5545_v44 = vand.u32 4294901760, %v5537_v37 }
  0x99   :  { %v846_v45 = vsub.f32 %v5531_v33, %v5540_v38 }
  0x9a   :  { %4295 = vmatmul.mubr.f32.vlgmr.msra.gmra.mrb[0].mxu0 %v202_v14  ;;  %v836_v43 = vsub.f32 %v5526_v31, %v5534_v36 }
  0x9b   :  { %4753 = vmatpush3.bf16.msra.mxu0 %v4730_v13  ;;  %4297 = vmatprep.mubr.f32.mxu0 %v212_v18 }
  0x9e   :  { %4298 = vmatmul.mubr.f32.gmra.mrb[2].mxu0 %v222_v19 }
  0x9f   :  { %4304 = vmatprep.mubr.f32.mxu0 %v5466_v9 }
  0xa2   :  { %4305 = vmatmul.mubr.f32.vlgmr.msra.gmra.mrb[0].mxu0 %v202_v14 }
  0xa3   :  { %4307 = vmatprep.mubr.f32.mxu0 %v212_v18 }
  0xa6   :  { %4308 = vmatmul.mubr.f32.gmra.mrb[2].mxu0 %v222_v19 }
 0x175   :  { %v4306_v51 = vpop.f32.mrb[0].mxu0 }
 0x176   :  { %v758_v52 = vand.u32 4294901760, %v4306_v51  ;;  %v691_v53 = vpop.f32.mrb[1].mxu0 }
 0x177   :  { %v755_v54 = vand.u32 4294901760, %v691_v53  ;;  %717 = vrot.lane.b32.xlu0 %v691_v53, %s5305_s5 }
 0x178   :  { %v872_v55 = vsub.f32 %v4306_v51, %v758_v52 }
 0x179   :  { %v5499_v56 = vpack.c.bf16 %v758_v52, %v755_v54  ;;  %v865_v57 = vsub.f32 %v691_v53, %v755_v54  ;;  %v4309_v58 = vpop.f32.mrb[2].mxu0  ;;  %v5549_v54 = vand.u32 4294901760, %v836_v43 }
 0x17a   :  { %v873_v59 = vand.u32 4294901760, %v872_v55  ;;  %v2002_v60 = vand.u32 4294901760, %v4309_v58  ;;  %v703_v61 = vpop.f32.mrb[3].mxu0 }
 0x17b   :  { %v866_v62 = vand.u32 4294901760, %v865_v57  ;;  %v1999_v63 = vand.u32 4294901760, %v703_v61  ;;  %719 = vrot.lane.b32.xlu0 %v4306_v51, %s5305_s5  ;;  %4755 = vmatprep.subr.bf16.mxu1 %v5499_v56  ;;  %v5503_v0 = vpack.c.bf16 %v872_v55, %v865_v57 }
 0x17c   :  { %v2116_v1 = vsub.f32 %v4309_v58, %v2002_v60  ;;  %721 = vrot.lane.b32.xlu1 %v703_v61, %s5305_s5  ;;  %4757 = vmatpush3.bf16.msra.mxu1 %v5499_v56  ;;  %v874_v3 = vsub.f32 %v872_v55, %v873_v59  ;;  %v856_v55 = vsub.f32 %v5537_v37, %v5545_v44 }
 0x17d   :  { %v5507_v4 = vpack.c.bf16 %v2002_v60, %v1999_v63  ;;  %v2109_v5 = vsub.f32 %v703_v61, %v1999_v63  ;;  %v867_v9 = vsub.f32 %v865_v57, %v866_v62  ;;  %v5509_v10 = vpack.c.bf16 %v873_v59, %v866_v62 }
 0x17e   :  { %v2117_v11 = vand.u32 4294901760, %v2116_v1  ;;  %v875_v12 = vand.u32 4294901760, %v874_v3  ;;  %v5553_v57 = vand.u32 4294901760, %v846_v45  ;;  %v5556_v59 = vand.u32 4294901760, %v856_v55 }
 0x17f   :  { %v2110_v13 = vand.u32 4294901760, %v2109_v5  ;;  %v868_v14 = vand.u32 4294901760, %v867_v9  ;;  %v5511_v15 = vpack.c.bf16 %v2116_v1, %v2109_v5 }
 0x180   :  { %723 = vrot.lane.b32.xlu1 %v4309_v58, %s5305_s5  ;;  %v2118_v16 = vsub.f32 %v2116_v1, %v2117_v11 }
 0x181   :  { %v4762_v17 = vpack.c.bf16 %v875_v12, %v868_v14  ;;  %v2111_v18 = vsub.f32 %v2109_v5, %v2110_v13  ;;  %v5514_v19 = vpack.c.bf16 %v2117_v11, %v2110_v13 }
 0x182   :  { %v2119_v20 = vand.u32 4294901760, %v2118_v16 }
 0x183   :  { %v2112_v21 = vand.u32 4294901760, %v2111_v18 }
 0x185   :  { %v5516_v22 = vpack.c.bf16 %v2119_v20, %v2112_v21 }
 0x1e9   :  { %v718_v34 = vpop.permute.xlu0 %717 }
 0x1ea   :  { %v761_v35 = vand.u32 4294901760, %v718_v34 }
 0x1ec   :  { %v879_v39 = vsub.f32 %v718_v34, %v761_v35 }
 0x1ed   :  { %v720_v40 = vpop.permute.xlu0 %719 }
 0x1ee   :  { %v880_v41 = vand.u32 4294901760, %v879_v39  ;;  %v764_v42 = vand.u32 4294901760, %v720_v40  ;;  %v722_v1 = vpop.permute.xlu1 %721 }
 0x1ef   :  { %v2005_v9 = vand.u32 4294901760, %v722_v1 }
 0x1f0   :  { %v4758_v49 = vpack.c.bf16 %v764_v42, %v761_v35  ;;  %v886_v51 = vsub.f32 %v720_v40, %v764_v42  ;;  %v881_v52 = vsub.f32 %v879_v39, %v880_v41  ;;  %v5648_v35 = vand.u32 4294901760, %v1382_v30 }
 0x1f2   :  { %v887_v53 = vand.u32 4294901760, %v886_v51  ;;  %4759 = vmatprep.subr.bf16.mxu1 %v4758_v49  ;;  %v882_v60 = vand.u32 4294901760, %v881_v52  ;;  %v4774_v63 = vpack.c.bf16 %v886_v51, %v879_v39  ;;  %v724_v3 = vpop.permute.xlu1 %723 }
 0x1f3   :  { %4761 = vmatpush3.bf16.msra.mxu1 %v4758_v49  ;;  %v2008_v5 = vand.u32 4294901760, %v724_v3 }
 0x1f4   :  { %v888_v58 = vsub.f32 %v886_v51, %v887_v53  ;;  %4763 = vmatprep.subr.bf16.mxu1 %v4762_v17 }
 0x1f5   :  { %v2130_v11 = vsub.f32 %v724_v3, %v2008_v5  ;;  %v4854_v14 = vpack.c.bf16 %v2008_v5, %v2005_v9 }
 0x1f6   :  { %4319 = vmatmul.mubr.f32.vlgmr.msra.gmra.mrb[0].mxu1 %v5549_v54  ;;  %v889_v61 = vand.u32 4294901760, %v888_v58 }
 0x1f7   :  { %4765 = vmatpush3.bf16.msra.mxu1 %v4762_v17  ;;  %4321 = vmatprep.mubr.f32.mxu1 %v5553_v57  ;;  %v2131_v12 = vand.u32 4294901760, %v2130_v11 }
 0x1f8   :  { %v4766_v62 = vpack.c.bf16 %v889_v61, %v882_v60 }
 0x1f9   :  { %v2132_v16 = vsub.f32 %v2130_v11, %v2131_v12 }
 0x1fa   :  { %4322 = vmatmul.mubr.f32.gmra.mrb[2].mxu1 %v5556_v59  ;;  %4767 = vmatprep.subr.bf16.mxu1 %v4766_v62 }
 0x1fb   :  { %4769 = vmatpush3.bf16.msra.mxu1 %v4766_v62  ;;  %4332 = vmatprep.mubr.f32.mxu1 %v5485_v46  ;;  %v2133_v17 = vand.u32 4294901760, %v2132_v16 }
 0x1fc   :  { %4771 = vmatprep.subr.bf16.mxu1 %v5503_v0 }
 0x1fe   :  { %4333 = vmatmul.mubr.f32.vlgmr.msra.gmra.mrb[0].mxu1 %v5520_v28 }
 0x1ff   :  { %4773 = vmatpush3.bf16.msra.mxu1 %v5503_v0  ;;  %4335 = vmatprep.mubr.f32.mxu1 %v5522_v29  ;;  %v4790_v0 = vpack.c.bf16 %v887_v53, %v880_v41 }
 0x200   :  { %4775 = vmatprep.subr.bf16.mxu1 %v4774_v63 }
 0x202   :  { %4336 = vmatmul.mubr.f32.gmra.mrb[2].mxu1 %v5528_v32 }
 0x203   :  { %4777 = vmatpush3.bf16.msra.mxu1 %v4774_v63  ;;  %4346 = vmatprep.mubr.f32.mxu1 %v5488_v47 }
 0x204   :  { %4779 = vmatprep.subr.bf16.mxu1 %v5499_v56 }
 0x206   :  { %4347 = vmatmul.mubr.f32.vlgmr.msra.gmra.mrb[0].mxu1 %v5526_v31 }
 0x207   :  { %4781 = vmatpush3.bf16.msra.mxu1 %v5499_v56  ;;  %4349 = vmatprep.mubr.f32.mxu1 %v5531_v33 }
 0x208   :  { %4783 = vmatprep.subr.bf16.mxu1 %v4758_v49 }
 0x20a   :  { %4350 = vmatmul.mubr.f32.gmra.mrb[2].mxu1 %v5537_v37 }
 0x20b   :  { %4785 = vmatpush3.bf16.msra.mxu1 %v4758_v49  ;;  %4360 = vmatprep.mubr.f32.mxu1 %v5491_v48 }
 0x20c   :  { %4787 = vmatprep.subr.bf16.mxu1 %v5509_v10 }
 0x20e   :  { %4361 = vmatmul.mubr.f32.vlgmr.msra.gmra.mrb[0].mxu1 %v5534_v36 }
 0x20f   :  { %4789 = vmatpush3.bf16.msra.mxu1 %v5509_v10  ;;  %4363 = vmatprep.mubr.f32.mxu1 %v5540_v38  ;;  %v2123_v10 = vsub.f32 %v722_v1, %v2005_v9 }
 0x210   :  { %4791 = vmatprep.subr.bf16.mxu1 %v4790_v0 }
 0x211   :  { %v2124_v13 = vand.u32 4294901760, %v2123_v10 }
 0x212   :  { %4364 = vmatmul.mubr.f32.gmra.mrb[2].mxu1 %v5545_v44 }
 0x213   :  { %4793 = vmatpush3.bf16.msra.mxu1 %v4790_v0  ;;  %4374 = vmatprep.mubr.f32.mxu1 %v5485_v46 }
 0x214   :  { %4795 = vmatprep.subr.bf16.mxu1 %v5499_v56 }
 0x216   :  { %4375 = vmatmul.mubr.f32.vlgmr.msra.gmra.mrb[0].mxu1 %v5520_v28 }
 0x217   :  { %4797 = vmatpush3.bf16.msra.mxu1 %v5499_v56  ;;  %4377 = vmatprep.mubr.f32.mxu1 %v5522_v29  ;;  %v2125_v56 = vsub.f32 %v2123_v10, %v2124_v13 }
 0x218   :  { %4799 = vmatprep.subr.bf16.mxu1 %v4758_v49 }
 0x219   :  { %v2126_v18 = vand.u32 4294901760, %v2125_v56 }
 0x21a   :  { %4378 = vmatmul.mubr.f32.gmra.mrb[2].mxu1 %v5528_v32 }
 0x21b   :  { %4801 = vmatpush3.bf16.msra.mxu1 %v4758_v49  ;;  %4388 = vmatprep.mubr.f32.mxu1 %v5485_v46  ;;  %v4862_v20 = vpack.c.bf16 %v2133_v17, %v2126_v18 }
 0x21c   :  { %4851 = vmatprep.subr.bf16.mxu1 %v5507_v4 }
 0x21e   :  { %4389 = vmatmul.mubr.f32.vlgmr.msra.gmra.mrb[0].mxu1 %v5520_v28 }
 0x21f   :  { %4853 = vmatpush3.bf16.msra.mxu1 %v5507_v4  ;;  %4391 = vmatprep.mubr.f32.mxu1 %v5522_v29 }
 0x220   :  { %4855 = vmatprep.subr.bf16.mxu1 %v4854_v14 }
 0x222   :  { %4392 = vmatmul.mubr.f32.gmra.mrb[2].mxu1 %v5528_v32 }
 0x223   :  { %4857 = vmatpush3.bf16.msra.mxu1 %v4854_v14  ;;  %4486 = vmatprep.mubr.f32.mxu1 %v5495_v50  ;;  %v4870_v50 = vpack.c.bf16 %v2130_v11, %v2123_v10 }
 0x224   :  { %4859 = vmatprep.subr.bf16.mxu1 %v5516_v22 }
 0x226   :  { %4487 = vmatmul.mubr.f32.vlgmr.msra.gmra.mrb[4].mxu1 %v5549_v54 }
 0x227   :  { %4861 = vmatpush3.bf16.msra.mxu1 %v5516_v22  ;;  %4489 = vmatprep.mubr.f32.mxu1 %v5553_v57 }
 0x228   :  { %4863 = vmatprep.subr.bf16.mxu1 %v4862_v20 }
 0x22a   :  { %4490 = vmatmul.mubr.f32.gmra.mrb[6].mxu1 %v5556_v59 }
 0x22b   :  { %4865 = vmatpush3.bf16.msra.mxu1 %v4862_v20  ;;  %4500 = vmatprep.mubr.f32.mxu1 %v5485_v46 }
 0x22c   :  { %4867 = vmatprep.subr.bf16.mxu1 %v5511_v15 }
 0x22e   :  { %4501 = vmatmul.mubr.f32.vlgmr.msra.gmra.mrb[4].mxu1 %v5520_v28 }
 0x22f   :  { %4869 = vmatpush3.bf16.msra.mxu1 %v5511_v15  ;;  %4503 = vmatprep.mubr.f32.mxu1 %v5522_v29  ;;  %v4886_v15 = vpack.c.bf16 %v2131_v12, %v2124_v13 }
 0x230   :  { %4871 = vmatprep.subr.bf16.mxu1 %v4870_v50 }
 0x232   :  { %4504 = vmatmul.mubr.f32.gmra.mrb[6].mxu1 %v5528_v32 }
 0x233   :  { %4873 = vmatpush3.bf16.msra.mxu1 %v4870_v50  ;;  %4514 = vmatprep.mubr.f32.mxu1 %v5488_v47  ;;  %v733_v47 = vld [vmem:[#allocation10] sm:$0xff] }
 0x234   :  { %4875 = vmatprep.subr.bf16.mxu1 %v5507_v4 }
 0x236   :  { %4515 = vmatmul.mubr.f32.vlgmr.msra.gmra.mrb[4].mxu1 %v5526_v31  ;;  %v738_v31 = vld [vmem:[#allocation5 + $0x8] sm:$0xff] }
 0x237   :  { %4877 = vmatpush3.bf16.msra.mxu1 %v5507_v4  ;;  %4517 = vmatprep.mubr.f32.mxu1 %v5531_v33 }
 0x238   :  { %4879 = vmatprep.subr.bf16.mxu1 %v4854_v14 }
 0x23a   :  { %4518 = vmatmul.mubr.f32.gmra.mrb[6].mxu1 %v5537_v37 }
 0x23b   :  { %4881 = vmatpush3.bf16.msra.mxu1 %v4854_v14  ;;  %4528 = vmatprep.mubr.f32.mxu1 %v5491_v48  ;;  %v1373_v48 = vsel %vm741_vm1, %v733_v47, 0 }
 0x23c   :  { %4883 = vmatprep.subr.bf16.mxu1 %v5514_v19 }
 0x23e   :  { %4529 = vmatmul.mubr.f32.vlgmr.msra.gmra.mrb[4].mxu1 %v5534_v36 }
 0x23f   :  { %4885 = vmatpush3.bf16.msra.mxu1 %v5514_v19  ;;  %4531 = vmatprep.mubr.f32.mxu1 %v5540_v38  ;;  %v5625_v19 = vand.u32 4294901760, %v1373_v48 }
 0x240   :  { %4887 = vmatprep.subr.bf16.mxu1 %v4886_v15 }
 0x242   :  { %4532 = vmatmul.mubr.f32.gmra.mrb[6].mxu1 %v5545_v44  ;;  %v5657_v44 = vsub.f32 %v1382_v30, %v5648_v35 }
 0x243   :  { %4889 = vmatpush3.bf16.msra.mxu1 %v4886_v15  ;;  %4542 = vmatprep.mubr.f32.mxu1 %v5485_v46 }
 0x244   :  { %4891 = vmatprep.subr.bf16.mxu1 %v5507_v4  ;;  %v5668_v62 = vand.u32 4294901760, %v5657_v44 }
 0x246   :  { %4543 = vmatmul.mubr.f32.vlgmr.msra.gmra.mrb[4].mxu1 %v5520_v28  ;;  %v1486_v17 = vsub.f32 %v5657_v44, %v5668_v62 }
 0x247   :  { %4893 = vmatpush3.bf16.msra.mxu1 %v5507_v4  ;;  %4545 = vmatprep.mubr.f32.mxu1 %v5522_v29  ;;  %v5628_v4 = vsub.f32 %v1373_v48, %v5625_v19 }
 0x248   :  { %4895 = vmatprep.subr.bf16.mxu1 %v4854_v14  ;;  %v5684_v23 = vand.u32 4294901760, %v1486_v17 }
 0x249   :  { %v5631_v21 = vand.u32 4294901760, %v5628_v4 }
 0x24a   :  { %4546 = vmatmul.mubr.f32.gmra.mrb[6].mxu1 %v5528_v32 }
 0x24b   :  { %4897 = vmatpush3.bf16.msra.mxu1 %v4854_v14  ;;  %4556 = vmatprep.mubr.f32.mxu1 %v5485_v46  ;;  %v1456_v46 = vsub.f32 %v5628_v4, %v5631_v21 }
 0x24d   :  { %v5635_v22 = vand.u32 4294901760, %v1456_v46 }
 0x24e   :  { %4557 = vmatmul.mubr.f32.vlgmr.msra.gmra.mrb[4].mxu1 %v5520_v28  ;;  %v5640_v28 = vand.u32 4294901760, %v1376_v25 }
 0x24f   :  { %4559 = vmatprep.mubr.f32.mxu1 %v5522_v29  ;;  %4402 = vmatprep.mubr.f32.mxu0 %v5635_v22  ;;  %v5642_v29 = vand.u32 4294901760, %v1379_v26 }
 0x250   :  { %v5646_v33 = vsub.f32 %v1376_v25, %v5640_v28 }
 0x251   :  { %v5651_v38 = vsub.f32 %v1379_v26, %v5642_v29  ;;  %v740_v26 = vld [vmem:[#allocation5 + $0x18] sm:$0xff] }
 0x252   :  { %4560 = vmatmul.mubr.f32.gmra.mrb[6].mxu1 %v5528_v32  ;;  %v737_v32 = vld [vmem:[#allocation5] sm:$0xff]  ;;  %v5654_v41 = vand.u32 4294901760, %v5646_v33 }
 0x253   :  { %v5660_v52 = vand.u32 4294901760, %v5651_v38 }
 0x254   :  { %v1466_v59 = vsub.f32 %v5646_v33, %v5654_v41 }
 0x255   :  { %v1476_v3 = vsub.f32 %v5651_v38, %v5660_v52 }
 0x256   :  { %v5675_v13 = vand.u32 4294901760, %v1466_v59 }
 0x257   :  { %v5681_v20 = vand.u32 4294901760, %v1476_v3 }
 0x2f1   :  { %v4390_v34 = vpop.f32.mrb[0].mxu1 }
 0x2f2   :  { %v1369_v36 = vmul.f32 %v4390_v34, %v738_v31  ;;  %v1346_v37 = vpop.f32.mrb[1].mxu1 }
 0x2f3   :  { %v1368_v39 = vmul.f32 %v1346_v37, %v737_v32 }
 0x2f4   :  { %v1388_v40 = vand.u32 4294901760, %v1369_v36 }
 0x2f5   :  { %v1385_v42 = vand.u32 4294901760, %v1368_v39  ;;  %v4393_v43 = vpop.f32.mrb[2].mxu1 }
 0x2f6   :  { %v1502_v45 = vsub.f32 %v1369_v36, %v1388_v40  ;;  %v1371_v49 = vmul.f32 %v4393_v43, %v738_v31  ;;  %v1358_v51 = vpop.f32.mrb[3].mxu1 }
 0x2f7   :  { %v5662_v53 = vpack.c.bf16 %v1388_v40, %v1385_v42  ;;  %v1495_v54 = vsub.f32 %v1368_v39, %v1385_v42  ;;  %v1370_v55 = vmul.f32 %v1358_v51, %v737_v32 }
 0x2f8   :  { %v1503_v57 = vand.u32 4294901760, %v1502_v45  ;;  %v1394_v58 = vand.u32 4294901760, %v1371_v49 }
 0x2f9   :  { %v1496_v60 = vand.u32 4294901760, %v1495_v54  ;;  %v1391_v61 = vand.u32 4294901760, %v1370_v55  ;;  %4803 = vmatprep.subr.bf16.mxu0 %v5662_v53  ;;  %v4818_v63 = vpack.c.bf16 %v1502_v45, %v1495_v54 }
 0x2fa   :  { %v1516_v1 = vsub.f32 %v1371_v49, %v1394_v58  ;;  %4805 = vmatpush3.bf16.msra.mxu0 %v5662_v53  ;;  %v1504_v0 = vsub.f32 %v1502_v45, %v1503_v57 }
 0x2fb   :  { %v5673_v5 = vpack.c.bf16 %v1394_v58, %v1391_v61  ;;  %v1509_v9 = vsub.f32 %v1370_v55, %v1391_v61  ;;  %v1497_v11 = vsub.f32 %v1495_v54, %v1496_v60  ;;  %v4834_v10 = vpack.c.bf16 %v1503_v57, %v1496_v60 }
 0x2fc   :  { %v1517_v12 = vand.u32 4294901760, %v1516_v1  ;;  %v1505_v14 = vand.u32 4294901760, %v1504_v0 }
 0x2fd   :  { %v1510_v16 = vand.u32 4294901760, %v1509_v9  ;;  %4807 = vmatprep.subr.bf16.mxu0 %v5673_v5  ;;  %v1498_v56 = vand.u32 4294901760, %v1497_v11  ;;  %v4822_v18 = vpack.c.bf16 %v1516_v1, %v1509_v9 }
 0x2fe   :  { %4809 = vmatpush3.bf16.msra.mxu0 %v5673_v5  ;;  %v1518_v50 = vsub.f32 %v1516_v1, %v1517_v12 }
 0x2ff   :  { %v4810_v15 = vpack.c.bf16 %v1505_v14, %v1498_v56  ;;  %v1511_v47 = vsub.f32 %v1509_v9, %v1510_v16  ;;  %v4838_v48 = vpack.c.bf16 %v1517_v12, %v1510_v16 }
 0x300   :  { %v1519_v46 = vand.u32 4294901760, %v1518_v50 }
 0x301   :  { %4403 = vmatmul.mubr.f32.vlgmr.msra.gmra.mrb[4].mxu0 %v5675_v13  ;;  %4811 = vmatprep.subr.bf16.mxu0 %v4810_v15  ;;  %v1512_v24 = vand.u32 4294901760, %v1511_v47 }
 0x302   :  { %4813 = vmatpush3.bf16.msra.mxu0 %v4810_v15  ;;  %4405 = vmatprep.mubr.f32.mxu0 %v5681_v20 }
 0x303   :  { %v4814_v25 = vpack.c.bf16 %v1519_v46, %v1512_v24 }
 0x305   :  { %4406 = vmatmul.mubr.f32.gmra.mrb[6].mxu0 %v5684_v23  ;;  %4815 = vmatprep.subr.bf16.mxu0 %v4814_v25 }
 0x306   :  { %4817 = vmatpush3.bf16.msra.mxu0 %v4814_v25  ;;  %4416 = vmatprep.mubr.f32.mxu0 %v5625_v19 }
 0x307   :  { %4819 = vmatprep.subr.bf16.mxu0 %v4818_v63 }
 0x309   :  { %4417 = vmatmul.mubr.f32.vlgmr.msra.gmra.mrb[4].mxu0 %v5640_v28 }
 0x30a   :  { %4821 = vmatpush3.bf16.msra.mxu0 %v4818_v63  ;;  %4419 = vmatprep.mubr.f32.mxu0 %v5642_v29 }
 0x30b   :  { %4823 = vmatprep.subr.bf16.mxu0 %v4822_v18 }
 0x30d   :  { %4420 = vmatmul.mubr.f32.gmra.mrb[6].mxu0 %v5648_v35 }
 0x30e   :  { %4825 = vmatpush3.bf16.msra.mxu0 %v4822_v18  ;;  %4430 = vmatprep.mubr.f32.mxu0 %v5628_v4 }
 0x30f   :  { %4827 = vmatprep.subr.bf16.mxu0 %v5662_v53 }
 0x311   :  { %4431 = vmatmul.mubr.f32.vlgmr.msra.gmra.mrb[4].mxu0 %v5646_v33 }
 0x312   :  { %4829 = vmatpush3.bf16.msra.mxu0 %v5662_v53  ;;  %4433 = vmatprep.mubr.f32.mxu0 %v5651_v38 }
 0x313   :  { %4831 = vmatprep.subr.bf16.mxu0 %v5673_v5 }
 0x315   :  { %4434 = vmatmul.mubr.f32.gmra.mrb[6].mxu0 %v5657_v44 }
 0x316   :  { %4833 = vmatpush3.bf16.msra.mxu0 %v5673_v5  ;;  %4444 = vmatprep.mubr.f32.mxu0 %v5631_v21 }
 0x317   :  { %4835 = vmatprep.subr.bf16.mxu0 %v4834_v10 }
 0x319   :  { %4445 = vmatmul.mubr.f32.vlgmr.msra.gmra.mrb[4].mxu0 %v5654_v41 }
 0x31a   :  { %4837 = vmatpush3.bf16.msra.mxu0 %v4834_v10  ;;  %4447 = vmatprep.mubr.f32.mxu0 %v5660_v52 }
 0x31b   :  { %4839 = vmatprep.subr.bf16.mxu0 %v4838_v48 }
 0x31d   :  { %4448 = vmatmul.mubr.f32.gmra.mrb[6].mxu0 %v5668_v62 }
 0x31e   :  { %4841 = vmatpush3.bf16.msra.mxu0 %v4838_v48  ;;  %4458 = vmatprep.mubr.f32.mxu0 %v5625_v19 }
 0x31f   :  { %4843 = vmatprep.subr.bf16.mxu0 %v5662_v53 }
 0x321   :  { %4459 = vmatmul.mubr.f32.vlgmr.msra.gmra.mrb[4].mxu0 %v5640_v28  ;;  %v4558_v30 = vpop.f32.mrb[4].mxu1 }
 0x322   :  { %v2613_v31 = vmul.f32 %v4558_v30, %v740_v26  ;;  %4845 = vmatpush3.bf16.msra.mxu0 %v5662_v53  ;;  %v2590_v32 = vpop.f32.mrb[5].mxu1  ;;  %4461 = vmatprep.mubr.f32.mxu0 %v5642_v29 }
 0x323   :  { %v2612_v34 = vmul.f32 %v2590_v32, %v739_v27  ;;  %4847 = vmatprep.subr.bf16.mxu0 %v5673_v5 }
 0x324   :  { %v2620_v36 = vand.u32 4294901760, %v2613_v31 }
 0x325   :  { %v2617_v37 = vand.u32 4294901760, %v2612_v34  ;;  %4462 = vmatmul.mubr.f32.gmra.mrb[6].mxu0 %v5648_v35  ;;  %v4561_v39 = vpop.f32.mrb[6].mxu1 }
 0x326   :  { %v2734_v40 = vsub.f32 %v2613_v31, %v2620_v36  ;;  %v2615_v42 = vmul.f32 %v4561_v39, %v740_v26  ;;  %4849 = vmatpush3.bf16.msra.mxu0 %v5673_v5  ;;  %v2602_v43 = vpop.f32.mrb[7].mxu1  ;;  %4472 = vmatprep.mubr.f32.mxu0 %v5625_v19 }
 0x327   :  { %v5713_v45 = vpack.c.bf16 %v2620_v36, %v2617_v37  ;;  %v2727_v49 = vsub.f32 %v2612_v34, %v2617_v37  ;;  %v2614_v51 = vmul.f32 %v2602_v43, %v739_v27 }
 0x328   :  { %v2735_v53 = vand.u32 4294901760, %v2734_v40  ;;  %v2626_v54 = vand.u32 4294901760, %v2615_v42 }
 0x329   :  { %v2728_v55 = vand.u32 4294901760, %v2727_v49  ;;  %v2623_v57 = vand.u32 4294901760, %v2614_v51  ;;  %4473 = vmatmul.mubr.f32.vlgmr.msra.gmra.mrb[4].mxu0 %v5640_v28  ;;  %4899 = vmatprep.subr.bf16.mxu0 %v5713_v45  ;;  %v4914_v58 = vpack.c.bf16 %v2734_v40, %v2727_v49 }
 0x32a   :  { %v2748_v59 = vsub.f32 %v2615_v42, %v2626_v54  ;;  %4901 = vmatpush3.bf16.msra.mxu0 %v5713_v45  ;;  %4475 = vmatprep.mubr.f32.mxu0 %v5642_v29  ;;  %v2736_v60 = vsub.f32 %v2734_v40, %v2735_v53 }
 0x32b   :  { %v4902_v61 = vpack.c.bf16 %v2626_v54, %v2623_v57  ;;  %v2741_v63 = vsub.f32 %v2614_v51, %v2623_v57  ;;  %v2729_v1 = vsub.f32 %v2727_v49, %v2728_v55  ;;  %v4930_v0 = vpack.c.bf16 %v2735_v53, %v2728_v55 }
 0x32c   :  { %v2749_v3 = vand.u32 4294901760, %v2748_v59  ;;  %v2737_v5 = vand.u32 4294901760, %v2736_v60 }
 0x32d   :  { %v2742_v9 = vand.u32 4294901760, %v2741_v63  ;;  %4476 = vmatmul.mubr.f32.gmra.mrb[6].mxu0 %v5648_v35  ;;  %4903 = vmatprep.subr.bf16.mxu0 %v4902_v61  ;;  %v2730_v11 = vand.u32 4294901760, %v2729_v1  ;;  %v4918_v10 = vpack.c.bf16 %v2748_v59, %v2741_v63 }
 0x32e   :  { %4905 = vmatpush3.bf16.msra.mxu0 %v4902_v61  ;;  %4570 = vmatprep.mubr.f32.mxu0 %v5635_v22  ;;  %v2750_v12 = vsub.f32 %v2748_v59, %v2749_v3 }
 0x32f   :  { %v4906_v14 = vpack.c.bf16 %v2737_v5, %v2730_v11  ;;  %v2743_v16 = vsub.f32 %v2741_v63, %v2742_v9  ;;  %v4934_v56 = vpack.c.bf16 %v2749_v3, %v2742_v9 }
 0x330   :  { %v2751_v17 = vand.u32 4294901760, %v2750_v12 }
 0x331   :  { %4571 = vmatmul.mubr.f32.vlgmr.msra.gmra.mrb[8].mxu0 %v5675_v13  ;;  %4907 = vmatprep.subr.bf16.mxu0 %v4906_v14  ;;  %v2744_v18 = vand.u32 4294901760, %v2743_v16 }
 0x332   :  { %4909 = vmatpush3.bf16.msra.mxu0 %v4906_v14  ;;  %4573 = vmatprep.mubr.f32.mxu0 %v5681_v20 }
 0x333   :  { %v4910_v50 = vpack.c.bf16 %v2751_v17, %v2744_v18 }
 0x335   :  { %4574 = vmatmul.mubr.f32.gmra.mrb[10].mxu0 %v5684_v23  ;;  %4911 = vmatprep.subr.bf16.mxu0 %v4910_v50 }
 0x336   :  { %4913 = vmatpush3.bf16.msra.mxu0 %v4910_v50  ;;  %4584 = vmatprep.mubr.f32.mxu0 %v5625_v19 }
 0x337   :  { %4915 = vmatprep.subr.bf16.mxu0 %v4914_v58 }
 0x339   :  { %4585 = vmatmul.mubr.f32.vlgmr.msra.gmra.mrb[8].mxu0 %v5640_v28 }
 0x33a   :  { %4917 = vmatpush3.bf16.msra.mxu0 %v4914_v58  ;;  %4587 = vmatprep.mubr.f32.mxu0 %v5642_v29 }
 0x33b   :  { %4919 = vmatprep.subr.bf16.mxu0 %v4918_v10 }
 0x33d   :  { %4588 = vmatmul.mubr.f32.gmra.mrb[10].mxu0 %v5648_v35 }
 0x33e   :  { %4921 = vmatpush3.bf16.msra.mxu0 %v4918_v10  ;;  %4598 = vmatprep.mubr.f32.mxu0 %v5628_v4  ;;  %v3250_v4 = vld [vmem:[#allocation11] sm:$0xff] }
 0x33f   :  { %4923 = vmatprep.subr.bf16.mxu0 %v5713_v45  ;;  %v3267_v22 = vand.u32 4294901760, %v3250_v4 }
 0x341   :  { %4599 = vmatmul.mubr.f32.vlgmr.msra.gmra.mrb[8].mxu0 %v5646_v33  ;;  %v3377_v20 = vsub.f32 %v3250_v4, %v3267_v22 }
 0x342   :  { %4925 = vmatpush3.bf16.msra.mxu0 %v5713_v45  ;;  %4601 = vmatprep.mubr.f32.mxu0 %v5651_v38 }
 0x343   :  { %4927 = vmatprep.subr.bf16.mxu0 %v4902_v61  ;;  %v3378_v47 = vand.u32 4294901760, %v3377_v20 }
 0x345   :  { %4602 = vmatmul.mubr.f32.gmra.mrb[10].mxu0 %v5657_v44  ;;  %v3253_v44 = vld [vmem:[#allocation11 + $0x18] sm:$0xff]  ;;  %v3379_v46 = vsub.f32 %v3377_v20, %v3378_v47 }
 0x346   :  { %4929 = vmatpush3.bf16.msra.mxu0 %v4902_v61  ;;  %4612 = vmatprep.mubr.f32.mxu0 %v5631_v21  ;;  %v3251_v21 = vld [vmem:[#allocation11 + $0x8] sm:$0xff] }
 0x347   :  { %4931 = vmatprep.subr.bf16.mxu0 %v4930_v0  ;;  %v3270_v33 = vand.u32 4294901760, %v3251_v21  ;;  %v3380_v26 = vand.u32 4294901760, %v3379_v46 }
 0x349   :  { %4613 = vmatmul.mubr.f32.vlgmr.msra.gmra.mrb[8].mxu0 %v5654_v41  ;;  %v5748_v38 = vpack.c.bf16 %v3270_v33, %v3267_v22  ;;  %v3252_v41 = vld [vmem:[#allocation11 + $0x10] sm:$0xff]  ;;  %v3384_v15 = vsub.f32 %v3251_v21, %v3270_v33 }
 0x34a   :  { %4933 = vmatpush3.bf16.msra.mxu0 %v4930_v0  ;;  %4615 = vmatprep.mubr.f32.mxu0 %v5660_v52  ;;  %v3273_v52 = vand.u32 4294901760, %v3252_v41 }
 0x34b   :  { %4935 = vmatprep.subr.bf16.mxu0 %v4934_v56  ;;  %4947 = vmatprep.subr.bf16.mxu1 %v5748_v38  ;;  %v3385_v48 = vand.u32 4294901760, %v3384_v15  ;;  %v4962_v51 = vpack.c.bf16 %v3384_v15, %v3377_v20 }
 0x34c   :  { %4949 = vmatpush3.bf16.msra.mxu1 %v5748_v38  ;;  %v3391_v24 = vsub.f32 %v3252_v41, %v3273_v52 }
 0x34d   :  { %4616 = vmatmul.mubr.f32.gmra.mrb[10].mxu0 %v5668_v62  ;;  %v3276_v62 = vand.u32 4294901760, %v3253_v44  ;;  %v3386_v23 = vsub.f32 %v3384_v15, %v3385_v48  ;;  %v4978_v54 = vpack.c.bf16 %v3385_v48, %v3378_v47 }
 0x34e   :  { %4937 = vmatpush3.bf16.msra.mxu0 %v4934_v56  ;;  %4626 = vmatprep.mubr.f32.mxu0 %v5625_v19  ;;  %v3392_v30 = vand.u32 4294901760, %v3391_v24 }
 0x34f   :  { %4939 = vmatprep.subr.bf16.mxu0 %v5713_v45  ;;  %v3398_v25 = vsub.f32 %v3253_v44, %v3276_v62  ;;  %v3387_v27 = vand.u32 4294901760, %v3386_v23 }
 0x350   :  { %v3393_v37 = vsub.f32 %v3391_v24, %v3392_v30 }
 0x351   :  { %4627 = vmatmul.mubr.f32.vlgmr.msra.gmra.mrb[8].mxu0 %v5640_v28  ;;  %v3399_v31 = vand.u32 4294901760, %v3398_v25  ;;  %v4954_v36 = vpack.c.bf16 %v3387_v27, %v3380_v26  ;;  %v4966_v53 = vpack.c.bf16 %v3398_v25, %v3391_v24 }
 0x352   :  { %4941 = vmatpush3.bf16.msra.mxu0 %v5713_v45  ;;  %4629 = vmatprep.mubr.f32.mxu0 %v5642_v29  ;;  %v3394_v40 = vand.u32 4294901760, %v3393_v37 }
 0x353   :  { %4943 = vmatprep.subr.bf16.mxu0 %v4902_v61  ;;  %v3400_v39 = vsub.f32 %v3398_v25, %v3399_v31  ;;  %v4982_v55 = vpack.c.bf16 %v3399_v31, %v3392_v30 }
 0x355   :  { %4630 = vmatmul.mubr.f32.gmra.mrb[10].mxu0 %v5648_v35  ;;  %v3401_v42 = vand.u32 4294901760, %v3400_v39 }
 0x356   :  { %4945 = vmatpush3.bf16.msra.mxu0 %v4902_v61  ;;  %4640 = vmatprep.mubr.f32.mxu0 %v5625_v19 }
 0x357   :  { %v4958_v49 = vpack.c.bf16 %v3401_v42, %v3394_v40 }
 0x359   :  { %4641 = vmatmul.mubr.f32.vlgmr.msra.gmra.mrb[8].mxu0 %v5640_v28  ;;  %v5752_v28 = vpack.c.bf16 %v3276_v62, %v3273_v52 }
 0x35a   :  { %4643 = vmatprep.mubr.f32.mxu0 %v5642_v29 }
 0x35b   :  { %4951 = vmatprep.subr.bf16.mxu1 %v5752_v28 }
 0x35c   :  { %4953 = vmatpush3.bf16.msra.mxu1 %v5752_v28 }
 0x35d   :  { %4644 = vmatmul.mubr.f32.gmra.mrb[10].mxu0 %v5648_v35  ;;  %4955 = vmatprep.subr.bf16.mxu1 %v4954_v36 }
 0x3fc   :  { %v4474_v13 = vpop.f32.mrb[4].mxu0 }
 0x3fd   :  { %v1976_v19 = vpop.f32.mrb[5].mxu0 }
 0x400   :  { %v4477_v29 = vpop.f32.mrb[6].mxu0 }
 0x401   :  { %3236 = vrot.lane.b32.xlu1 %v4477_v29, %s5306_s20  ;;  %v1988_v35 = vpop.f32.mrb[7].mxu0 }
 0x402   :  { %3234 = vrot.lane.b32.xlu0 %v1988_v35, %s5306_s20 }
 0x42c   :  { %v4642_v32 = vpop.f32.mrb[8].mxu0 }
 0x42d   :  { %v3208_v34 = vpop.f32.mrb[9].mxu0 }
 0x430   :  { %v4645_v43 = vpop.f32.mrb[10].mxu0 }
 0x431   :  { %3240 = vrot.lane.b32.xlu1 %v4645_v43, %s5306_s20  ;;  %v3220_v45 = vpop.f32.mrb[11].mxu0 }
 0x432   :  { %3238 = vrot.lane.b32.xlu0 %v3220_v45, %s5306_s20 }
 0x473   :  { %v3237_v57 = vpop.permute.xlu1 %3236 }
 0x474   :  { %v3247_v58 = vsel %vm112_vm0, %v4474_v13, %v3237_v57  ;;  %v3235_v59 = vpop.permute.xlu0 %3234 }
 0x475   :  { %v3258_v60 = vsel %vm741_vm1, %v3247_v58, 0  ;;  %v3246_v61 = vsel %vm112_vm0, %v1976_v19, %v3235_v59 }
 0x476   :  { %v5759_v63 = vand.u32 4294901760, %v3258_v60  ;;  %v3255_v1 = vsel %vm741_vm1, %v3246_v61, 0 }
 0x477   :  { %v5762_v0 = vand.u32 4294901760, %v3255_v1 }
 0x478   :  { %v3346_v3 = vsub.f32 %v3258_v60, %v5759_v63 }
 0x479   :  { %v3336_v5 = vsub.f32 %v3255_v1, %v5762_v0 }
 0x47a   :  { %v3347_v9 = vand.u32 4294901760, %v3346_v3 }
 0x47b   :  { %v3337_v11 = vand.u32 4294901760, %v3336_v5 }
 0x47c   :  { %v3348_v10 = vsub.f32 %v3346_v3, %v3347_v9 }
 0x47d   :  { %v3338_v12 = vsub.f32 %v3336_v5, %v3337_v11 }
 0x47e   :  { %v3349_v16 = vand.u32 4294901760, %v3348_v10 }
 0x47f   :  { %v3339_v14 = vand.u32 4294901760, %v3338_v12 }
 0x481   :  { %4654 = vmatprep.mubr.f32.mxu1 %v3339_v14 }
 0x482   :  { %4655 = vmatmul.mubr.f32.vlgmr.msra.gmra.mrb[8].mxu1 %v3349_v16 }
 0x483   :  { %4957 = vmatpush3.bf16.msra.mxu1 %v4954_v36 }
 0x484   :  { %4959 = vmatprep.subr.bf16.mxu1 %v4958_v49 }
 0x487   :  { %4961 = vmatpush3.bf16.msra.mxu1 %v4958_v49 }
 0x488   :  { %4963 = vmatprep.subr.bf16.mxu1 %v4962_v51 }
 0x4a3   :  { %v3241_v56 = vpop.permute.xlu1 %3240 }
 0x4a4   :  { %v3249_v17 = vsel %vm112_vm0, %v4642_v32, %v3241_v56  ;;  %v3239_v18 = vpop.permute.xlu0 %3238 }
 0x4a5   :  { %v3264_v50 = vsel %vm741_vm1, %v3249_v17, 0  ;;  %v3248_v4 = vsel %vm112_vm0, %v3208_v34, %v3239_v18 }
 0x4a6   :  { %v3365_v21 = vand.u32 4294901760, %v3264_v50  ;;  %v3261_v22 = vsel %vm741_vm1, %v3248_v4, 0 }
 0x4a7   :  { %v3355_v33 = vand.u32 4294901760, %v3261_v22 }
 0x4a8   :  { %v3366_v41 = vsub.f32 %v3264_v50, %v3365_v21 }
 0x4a9   :  { %v3356_v44 = vsub.f32 %v3261_v22, %v3355_v33 }
 0x4aa   :  { %v3367_v52 = vand.u32 4294901760, %v3366_v41 }
 0x4ab   :  { %v3357_v62 = vand.u32 4294901760, %v3356_v44 }
 0x4ac   :  { %v3368_v13 = vsub.f32 %v3366_v41, %v3367_v52 }
 0x4ad   :  { %v3358_v19 = vsub.f32 %v3356_v44, %v3357_v62 }
 0x4ae   :  { %v3369_v35 = vand.u32 4294901760, %v3368_v13 }
 0x4af   :  { %v3359_v29 = vand.u32 4294901760, %v3358_v19 }
 0x4b1   :  { %4657 = vmatprep.mubr.f32.mxu1 %v3359_v29 }
 0x4b2   :  { %4658 = vmatmul.mubr.f32.gmra.mrb[10].mxu1 %v3369_v35 }
 0x4b3   :  { %4668 = vmatprep.mubr.f32.mxu1 %v5762_v0 }
 0x4b6   :  { %4669 = vmatmul.mubr.f32.vlgmr.msra.gmra.mrb[8].mxu1 %v5759_v63 }
 0x4b7   :  { %4671 = vmatprep.mubr.f32.mxu1 %v3355_v33  ;;  %4965 = vmatpush3.bf16.msra.mxu1 %v4962_v51 }
 0x4b8   :  { %4967 = vmatprep.subr.bf16.mxu1 %v4966_v53 }
 0x4ba   :  { %4672 = vmatmul.mubr.f32.gmra.mrb[10].mxu1 %v3365_v21 }
 0x4bb   :  { %4969 = vmatpush3.bf16.msra.mxu1 %v4966_v53  ;;  %4682 = vmatprep.mubr.f32.mxu1 %v3336_v5 }
 0x4bc   :  { %4971 = vmatprep.subr.bf16.mxu1 %v5748_v38 }
 0x4be   :  { %4683 = vmatmul.mubr.f32.vlgmr.msra.gmra.mrb[8].mxu1 %v3346_v3 }
 0x4bf   :  { %4685 = vmatprep.mubr.f32.mxu1 %v3356_v44  ;;  %4973 = vmatpush3.bf16.msra.mxu1 %v5748_v38 }
 0x4c0   :  { %4975 = vmatprep.subr.bf16.mxu1 %v5752_v28 }
 0x4c2   :  { %4686 = vmatmul.mubr.f32.gmra.mrb[10].mxu1 %v3366_v41 }
 0x4c3   :  { %4977 = vmatpush3.bf16.msra.mxu1 %v5752_v28  ;;  %4696 = vmatprep.mubr.f32.mxu1 %v3337_v11 }
 0x4c4   :  { %4979 = vmatprep.subr.bf16.mxu1 %v4978_v54 }
 0x4c6   :  { %4697 = vmatmul.mubr.f32.vlgmr.msra.gmra.mrb[8].mxu1 %v3347_v9 }
 0x4c7   :  { %4699 = vmatprep.mubr.f32.mxu1 %v3357_v62  ;;  %4981 = vmatpush3.bf16.msra.mxu1 %v4978_v54 }
 0x4c8   :  { %4983 = vmatprep.subr.bf16.mxu1 %v4982_v55 }
 0x4ca   :  { %4700 = vmatmul.mubr.f32.gmra.mrb[10].mxu1 %v3367_v52 }
 0x4cb   :  { %4985 = vmatpush3.bf16.msra.mxu1 %v4982_v55  ;;  %4710 = vmatprep.mubr.f32.mxu1 %v5762_v0 }
 0x4cc   :  { %4987 = vmatprep.subr.bf16.mxu1 %v5748_v38 }
 0x4ce   :  { %4711 = vmatmul.mubr.f32.vlgmr.msra.gmra.mrb[8].mxu1 %v5759_v63 }
 0x4cf   :  { %4713 = vmatprep.mubr.f32.mxu1 %v3355_v33  ;;  %4989 = vmatpush3.bf16.msra.mxu1 %v5748_v38 }
 0x4d0   :  { %4991 = vmatprep.subr.bf16.mxu1 %v5752_v28 }
 0x4d2   :  { %4714 = vmatmul.mubr.f32.gmra.mrb[10].mxu1 %v3365_v21 }
 0x4d3   :  { %4993 = vmatpush3.bf16.msra.mxu1 %v5752_v28  ;;  %4724 = vmatprep.mubr.f32.mxu1 %v5762_v0 }
 0x4d6   :  { %4725 = vmatmul.mubr.f32.vlgmr.msra.gmra.mrb[8].mxu1 %v5759_v63 }
 0x4d7   :  { %4727 = vmatprep.mubr.f32.mxu1 %v3355_v33 }
 0x4da   :  { %4728 = vmatmul.mubr.f32.gmra.mrb[10].mxu1 %v3365_v21 }
 0x5a9   :  { %v4726_v20 = vpop.f32.mrb[8].mxu1 }
 0x5aa   :  { %v3881_v15 = vmul.f32 %v4726_v20, %v4726_v20  ;;  %v3858_v47 = vpop.f32.mrb[9].mxu1 }
 0x5ab   :  { %v3880_v48 = vmul.f32 %v3858_v47, %v3858_v47 }
 0x5ac   :  { %3890 = vrot.lane.b32.xlu1 %v3881_v15, %s5305_s5 }
 0x5ad   :  { %3888 = vrot.lane.b32.xlu0 %v3880_v48, %s5305_s5  ;;  %v4729_v38 = vpop.f32.mrb[10].mxu1 }
 0x5ae   :  { %v3883_v46 = vmul.f32 %v4729_v38, %v4729_v38  ;;  %v3870_v23 = vpop.f32.mrb[11].mxu1 }
 0x5af   :  { %v3882_v24 = vmul.f32 %v3870_v23, %v3870_v23 }
 0x5b0   :  { %3894 = vrot.lane.b32.xlu1 %v3883_v46, %s5305_s5 }
 0x5b1   :  { %3892 = vrot.lane.b32.xlu0 %v3882_v24, %s5305_s5 }
 0x61e   :  { %v3891_v28 = vpop.permute.xlu1 %3890 }
 0x61f   :  { %v3901_v25 = vadd.f32 %v3891_v28, %v3881_v15  ;;  %v3889_v26 = vpop.permute.xlu0 %3888 }
 0x620   :  { %v3900_v27 = vadd.f32 %v3889_v26, %v3880_v48 }
 0x621   :  { %5125 = vrsqrt.f32 %v3901_v25  ;;  %vm3913_vm2 = vcmp.eq.f32.partialorder %v3901_v25, inf  ;;  %v3916_v40 = vand.u32 2147483648, %v3901_v25  ;;  %vm3915_vm3 = vcmp.eq.f32.partialorder %v3901_v25, 0.0 }
 0x622   :  { %5127 = vrsqrt.f32 %v3900_v27  ;;  %v3895_v30 = vpop.permute.xlu1 %3894  ;;  %vm3906_vm4 = vcmp.eq.f32.partialorder %v3900_v27, inf  ;;  %v3909_v45 = vand.u32 2147483648, %v3900_v27  ;;  %vm3908_vm5 = vcmp.eq.f32.partialorder %v3900_v27, 0.0 }
 0x623   :  { %v3903_v31 = vadd.f32 %v3895_v30, %v3883_v46  ;;  %v3893_v32 = vpop.permute.xlu0 %3892 }
 0x624   :  { %v3902_v34 = vadd.f32 %v3893_v32, %v3882_v24 }
 0x625   :  { %5129 = vrsqrt.f32 %v3903_v31  ;;  %vm3927_vm6 = vcmp.eq.f32.partialorder %v3903_v31, inf  ;;  %vm3929_vm7 = vcmp.eq.f32.partialorder %v3903_v31, 0.0  ;;  %v3930_v60 = vand.u32 2147483648, %v3903_v31 }
 0x626   :  { %5131 = vrsqrt.f32 %v3902_v34  ;;  %vm3920_vm8 = vcmp.eq.f32.partialorder %v3902_v34, inf  ;;  %v3923_v0 = vand.u32 2147483648, %v3902_v34  ;;  %vm3922_vm9 = vcmp.eq.f32.partialorder %v3902_v34, 0.0 }
 0x62b   :  { %v5126_v36 = vpop.eup %5125 }
 0x62c   :  { %v5128_v37 = vpop.eup %5127  ;;  %v3912_v39 = vmul.f32 %v5126_v36, %v3901_v25 }
 0x62d   :  { %v3905_v42 = vmul.f32 %v5128_v37, %v3900_v27 }
 0x62e   :  { %v3914_v43 = vsel %vm3913_vm2, %v3901_v25, %v3912_v39 }
 0x62f   :  { %v5130_v49 = vpop.eup %5129  ;;  %v3917_v51 = vsel %vm3915_vm3, %v3916_v40, %v3914_v43  ;;  %v3907_v53 = vsel %vm3906_vm4, %v3900_v27, %v3905_v42 }
 0x630   :  { %v5132_v54 = vpop.eup %5131  ;;  %3938 = vst.msk [vmem:[#allocation13 + $0x18] sm:$0xff] %vm112_vm0, %v3917_v51  ;;  %v3942_v55 = vsub.f32 %v3917_v51, %v5460_v6  ;;  %v3910_v57 = vsel %vm3908_vm5, %v3909_v45, %v3907_v53  ;;  %v3926_v58 = vmul.f32 %v5130_v49, %v3903_v31 }
 0x631   :  { %3937 = vst.msk [vmem:[#allocation13 + $0x10] sm:$0xff] %vm112_vm0, %v3910_v57  ;;  %v3941_v59 = vsub.f32 %v3910_v57, %v5454_v2  ;;  %v3919_v61 = vmul.f32 %v5132_v54, %v3902_v34 }
 0x632   :  { %v3946_v63 = vand.u32 2147483647, %v3942_v55  ;;  %v3928_v1 = vsel %vm3927_vm6, %v3903_v31, %v3926_v58 }
 0x633   :  { %v3945_v3 = vand.u32 2147483647, %v3941_v59  ;;  %v3931_v5 = vsel %vm3929_vm7, %v3930_v60, %v3928_v1  ;;  %v3921_v9 = vsel %vm3920_vm8, %v3902_v34, %v3919_v61 }
 0x634   :  { %3951 = vst.msk [vmem:[#allocation13 + $0x28] sm:$0xff] %vm112_vm0, %v3946_v63  ;;  %3940 = vst.msk [vmem:[#allocation13 + $0x48] sm:$0xff] %vm112_vm0, %v3931_v5  ;;  %v3944_v6 = vsub.f32 %v3931_v5, %v5464_v8  ;;  %v3924_v11 = vsel %vm3922_vm9, %v3923_v0, %v3921_v9 }
 0x635   :  { %3950 = vst.msk [vmem:[#allocation13 + $0x20] sm:$0xff] %vm112_vm0, %v3945_v3  ;;  %3939 = vst.msk [vmem:[#allocation13 + $0x40] sm:$0xff] %vm112_vm0, %v3924_v11  ;;  %v3943_v2 = vsub.f32 %v3924_v11, %v5462_v7 }
 0x636   :  { %v3948_v10 = vand.u32 2147483647, %v3944_v6 }
 0x637   :  { %v3947_v12 = vand.u32 2147483647, %v3943_v2 }
 0x638   :  { %3953 = vst.msk [vmem:[#allocation13 + $0x58] sm:$0xff] %vm112_vm0, %v3948_v10 }
 0x639   :  { %3952 = vst.msk [vmem:[#allocation13 + $0x50] sm:$0xff] %vm112_vm0, %v3947_v12 }
 0x63a   :  { %5276 = shalt.err (!%p5273_p10)
}
 0x63b   :  { %s5277_s25 = scalar_lea.hbm %s5821_s6, 1536 }
 0x63c   :  { %p5278_p11 = scmp.ne.s32.totalorder %s5821_s6, %s5277_s25  ;;  %p5281_p12 = scmp.lt.u32.totalorder %s5277_s25, %s5821_s6 }
 0x63e   :  { %p5283_p13 = pnand %p5281_p12, %p5278_p11 }
 0x640   :  { %5286 = shalt.err (!%p5283_p13)
}
 0x641   :  { %3965 = dma.vmem_to_hbm [thread:$0]  %s3960_s1, 1536, %s5821_s6, [#allocation4], %s5299_s9, %s5299_s9, %s5300_s10  }
 0x642   :  { %5295 = dma.done.wait [#allocation4], 1536  }
 0x643   :  { %5296 = vsyncadd [#allocation4], 4294965760 }
 0x644   :  { %3969 = vsyncpa [#allocation3], 1 }
 0x645   :  { %3970 = vsyncpa [#allocation6], 1 }
 0x646   :  { %3971 = vsyncpa [#allocation9], 1 }
 0x647   :  { %3972 = vsyncpa [#allocation12], 1 }
 0x648   :  { %3973 = vsyncpa [#allocation4], 1 }

</bundles_post_ra>
